<compile_context>
chip_gen: v7x
topology: tpu7x:2x2x1
jax: 0.10.0
libtpu: 0.0.40
codegen_flags: <defaults>
</compile_context>

<pallas_src>
import functools

import jax
import jax.numpy as jnp
from jax.experimental import pallas as pl
from jax.experimental.pallas import tpu as pltpu


def _residual_block_kernel(xp_ref, w1_ref, b1_ref, w2_ref, b2_ref, o_ref, y1p_ref):
    # xp_ref : (1, H+4, W+2, C)  zero-padded NHWC input (rows padded by 2, cols by 1),
    #                            resident in VMEM across the row-tile grid axis.
    # w*_ref : (9*C, C)          im2col-flattened conv weights ((kh, kw, ci) major->minor).
    # b*_ref : (1, C)            f32 biases.
    # o_ref  : (1, TH, W, C)     output row tile.
    # y1p_ref: (TH+2, W+2, C)    f32 scratch: column-padded ReLU(conv1) slab (1-row halo).
    C = xp_ref.shape[3]
    W = xp_ref.shape[2] - 2
    TH = o_ref.shape[1]
    mxu_dtype = w1_ref.dtype

    r = pl.program_id(1)
    row_start = pl.multiple_of(r * TH, TH)

    # One dynamic load of the (TH+4)-row input slab; every conv1 tap and the
    # residual are static slices of it (no extra VMEM round-trips).
    slab = xp_ref[0, pl.ds(row_start, TH + 4), :, :]            # (TH+4, W+2, C) f32

    # ---- conv1 + bias + ReLU: single im2col matmul (K folded to 9*C) ---------
    patches1 = jnp.concatenate(
        [slab[dh:dh + TH + 2, dw:dw + W, :] for dh in range(3) for dw in range(3)],
        axis=-1)                                                # (TH+2, W, 9C)
    y1 = jnp.dot(patches1.reshape((TH + 2) * W, 9 * C).astype(mxu_dtype),
                 w1_ref[...],
                 preferred_element_type=jnp.float32)            # ((TH+2)*W, C) f32
    y1 = jnp.maximum(y1 + b1_ref[...], 0.0).reshape(TH + 2, W, C)

    # Stage into the column-padded scratch.  Only the two border columns need
    # zeros (re-written every step: cheap, and safe under megacore sharding);
    # the interior is fully overwritten each step.
    y1p_ref[:, 0:1, :] = jnp.zeros((TH + 2, 1, C), jnp.float32)
    y1p_ref[:, W + 1:, :] = jnp.zeros((TH + 2, 1, C), jnp.float32)
    y1p_ref[:, 1:W + 1, :] = y1

    # The one-row halo above/below the tile is conv2's zero padding at the image
    # top/bottom; zero it only on those tiles (interior tiles carry real y1 rows).
    @pl.when(r == 0)
    def _zero_top_halo():
        y1p_ref[0:1, :, :] = jnp.zeros((1, W + 2, C), jnp.float32)

    @pl.when(r == pl.num_programs(1) - 1)
    def _zero_bottom_halo():
        y1p_ref[TH + 1:, :, :] = jnp.zeros((1, W + 2, C), jnp.float32)

    # ---- conv2 + bias: same im2col fold ---------------------------------------
    patches2 = jnp.concatenate(
        [y1p_ref[dh:dh + TH, dw:dw + W, :] for dh in range(3) for dw in range(3)],
        axis=-1)                                                # (TH, W, 9C)
    out = jnp.dot(patches2.reshape(TH * W, 9 * C).astype(mxu_dtype),
                  w2_ref[...],
                  preferred_element_type=jnp.float32)           # (TH*W, C) f32
    out = (out + b2_ref[...]).reshape(TH, W, C)

    # TODO(synk): nn.Dropout(0.5) is identity in eval mode; training-mode RNG
    # masking (which cannot match PyTorch's RNG stream anyway) is not implemented.

    # ---- residual add ----------------------------------------------------------
    residual = slab[2:TH + 2, 1:W + 1, :]                        # this tile's image rows
    o_ref[...] = (out + residual).reshape(1, TH, W, C).astype(o_ref.dtype)


def residual_block_pallas(x_nchw, w1, b1, w2, b2, *,
                          compute_dtype=jnp.bfloat16, tile_h=None):
    """x_nchw: (N, C, H, W) f32.  w*: (Cout, Cin, 3, 3) torch OIHW.  b*: (C,).

    compute_dtype: dtype of the MXU matmul operands (accumulation is always f32);
                   bfloat16 by default per v6e/v7x guidance, pass jnp.float32 for
                   bit-accurate checking.
    tile_h:        output rows per grid step; must divide H and (unless == H) be
                   a multiple of 8.
    """
    N, C, H, W = x_nchw.shape
    if tile_h is None:
        # TODO(synk): for large H/W/C pick tile_h per TPU generation from the VMEM budget.
        tile_h = 8 if H % 8 == 0 else H
    assert H % tile_h == 0
    n_row_tiles = H // tile_h

    # NCHW -> NHWC; pad rows by 2 (row-tile conv1 halo) and cols by 1 with zeros.
    x_nhwc = jnp.transpose(x_nchw, (0, 2, 3, 1)).astype(jnp.float32)
    x_pad = jnp.pad(x_nhwc, ((0, 0), (2, 2), (1, 1), (0, 0)))

    def im2col_weight(w):
        # OIHW -> HWIO -> (9*Cin, Cout); row order (kh, kw, ci) matches the
        # in-kernel tap-concatenation order.
        return jnp.transpose(w, (2, 3, 1, 0)).reshape(9 * C, C).astype(compute_dtype)

    w1f = im2col_weight(w1)
    w2f = im2col_weight(w2)
    b1_2d = b1.reshape(1, C).astype(jnp.float32)
    b2_2d = b2.reshape(1, C).astype(jnp.float32)

    out_nhwc = pl.pallas_call(
        _residual_block_kernel,
        out_shape=jax.ShapeDtypeStruct((N, H, W, C), jnp.float32),
        grid_spec=pltpu.PrefetchScalarGridSpec(
            num_scalar_prefetch=0,
            grid=(N, n_row_tiles),
            in_specs=[
                # Padded image: resident across the row-tile axis (fetched once per n).
                pl.BlockSpec((1, H + 4, W + 2, C), lambda n, r: (n, 0, 0, 0)),
                # Weights / biases: constant index_map -> fetched once, stay resident.
                pl.BlockSpec((9 * C, C), lambda n, r: (0, 0)),
                pl.BlockSpec((1, C), lambda n, r: (0, 0)),
                pl.BlockSpec((9 * C, C), lambda n, r: (0, 0)),
                pl.BlockSpec((1, C), lambda n, r: (0, 0)),
            ],
            out_specs=pl.BlockSpec((1, tile_h, W, C), lambda n, r: (n, r, 0, 0)),
            scratch_shapes=[pltpu.VMEM((tile_h + 2, W + 2, C), jnp.float32)],
        ),
        compiler_params=pltpu.CompilerParams(
            # Both axes are independent -> megacore-shardable on v7x; neutral on v5e/v6e.
            dimension_semantics=("parallel", "parallel"),
            # Explicit scoped-VMEM budget (raise toward ~half of physical VMEM when
            # tile_h / C are scaled up; usage at this test shape is well under 1 MiB).
            vmem_limit_bytes=32 * 1024 * 1024,
        ),
    )(x_pad, w1f, b1_2d, w2f, b2_2d)

    return jnp.transpose(out_nhwc, (0, 3, 1, 2))


def residual_block_ref(x_nchw, w1, b1, w2, b2):
    """Pure-JAX reference (same semantics as the PyTorch module in eval mode)."""
    dn = ("NCHW", "OIHW", "NCHW")
    y = jax.lax.conv_general_dilated(x_nchw, w1, (1, 1), "SAME", dimension_numbers=dn)
    y = jnp.maximum(y + b1[None, :, None, None], 0.0)
    y = jax.lax.conv_general_dilated(y, w2, (1, 1), "SAME", dimension_numbers=dn)
    y = y + b2[None, :, None, None]
    return y + x_nchw


if __name__ == "__main__":
    key = jax.random.PRNGKey(0)
    k_x, k_w1, k_b1, k_w2, k_b2 = jax.random.split(key, 5)

    N, C, H, W = 2, 4, 16, 16
    x = jax.random.normal(k_x, (N, C, H, W), dtype=jnp.float32)

    # Deterministic synthetic parameters (shapes from nn.Conv2d(C, C, 3, padding=1)).
    w1 = 0.1 * jax.random.normal(k_w1, (C, C, 3, 3), dtype=jnp.float32)
    b1 = 0.1 * jax.random.normal(k_b1, (C,), dtype=jnp.float32)
    w2 = 0.1 * jax.random.normal(k_w2, (C, C, 3, 3), dtype=jnp.float32)
    b2 = 0.1 * jax.random.normal(k_b2, (C,), dtype=jnp.float32)

    ref = jax.block_until_ready(residual_block_ref(x, w1, b1, w2, b2))

    # f32 MXU path: tight check of the conv / residual structure.
    fwd_f32 = jax.jit(functools.partial(residual_block_pallas, compute_dtype=jnp.float32))
    out_f32 = jax.block_until_ready(fwd_f32(x, w1, b1, w2, b2))
    assert out_f32.shape == (N, C, H, W)
    assert jnp.allclose(out_f32, ref, atol=1e-4, rtol=1e-4), "f32 kernel mismatch vs reference"

    # bf16 MXU path (default, per v6e/v7x guidance): matmul operands are rounded to
    # bfloat16 (accumulation stays f32), hence the documented looser tolerance.
    fwd_bf16 = jax.jit(residual_block_pallas)
    out_bf16 = jax.block_until_ready(fwd_bf16(x, w1, b1, w2, b2))
    assert out_bf16.shape == (N, C, H, W)
    assert jnp.allclose(out_bf16, ref, atol=5e-2, rtol=5e-2), "bf16 kernel mismatch vs reference"

    print("KERNEL_OK")
</pallas_src>

<mosaic_0001>
module attributes {stable_mosaic.version = 11 : i64} {
  func.func @_residual_block_kernel(%arg0: i32, %arg1: i32, %arg2: memref<1x20x18x4xf32, #tpu.memory_space<vmem>>, %arg3: memref<36x4xf32, #tpu.memory_space<vmem>>, %arg4: memref<1x4xf32, #tpu.memory_space<vmem>>, %arg5: memref<36x4xf32, #tpu.memory_space<vmem>>, %arg6: memref<1x4xf32, #tpu.memory_space<vmem>>, %arg7: memref<1x8x16x4xf32, #tpu.memory_space<vmem>>, %arg8: memref<10x18x4xf32, #tpu.memory_space<vmem>>) attributes {dimension_semantics = [#tpu.dimension_semantics<parallel>, #tpu.dimension_semantics<parallel>], iteration_bounds = array<i64: 2, 2>, scalar_prefetch = 0 : i64, scratch_operands = 1 : i64, tpu.core_type = #tpu.core_type<tc>, window_params = [{transform_indices = @transform_0, window_bounds = array<i64: 1, 20, 18, 4>}, {pipeline_mode = #tpu.pipeline_mode<synchronous>, transform_indices = @transform_1, window_bounds = array<i64: 36, 4>}, {pipeline_mode = #tpu.pipeline_mode<synchronous>, transform_indices = @transform_2, window_bounds = array<i64: 1, 4>}, {pipeline_mode = #tpu.pipeline_mode<synchronous>, transform_indices = @transform_3, window_bounds = array<i64: 36, 4>}, {pipeline_mode = #tpu.pipeline_mode<synchronous>, transform_indices = @transform_4, window_bounds = array<i64: 1, 4>}, {transform_indices = @transform_5, window_bounds = array<i64: 1, 8, 16, 4>}]} {
    %c8_i32 = arith.constant 8 : i32
    %0 = arith.muli %arg1, %c8_i32 : i32
    %1 = tpu.assume_multiple %0, 8 : i32
    %c0 = arith.constant 0 : index
    %2 = arith.index_cast %1 : i32 to index
    %c0_0 = arith.constant 0 : index
    %c0_1 = arith.constant 0 : index
    %3 = vector.load %arg2[%c0, %2, %c0_0, %c0_1] : memref<1x20x18x4xf32, #tpu.memory_space<vmem>>, vector<1x12x18x4xf32>
    %4 = vector.shape_cast %3 : vector<1x12x18x4xf32> to vector<12x18x4xf32>
    %5 = vector.extract_strided_slice %4 {offsets = [0, 0, 0], sizes = [10, 16, 4], strides = [1, 1, 1]} : vector<12x18x4xf32> to vector<10x16x4xf32>
    %6 = vector.extract_strided_slice %4 {offsets = [0, 1, 0], sizes = [10, 16, 4], strides = [1, 1, 1]} : vector<12x18x4xf32> to vector<10x16x4xf32>
    %7 = vector.extract_strided_slice %4 {offsets = [0, 2, 0], sizes = [10, 16, 4], strides = [1, 1, 1]} : vector<12x18x4xf32> to vector<10x16x4xf32>
    %8 = vector.extract_strided_slice %4 {offsets = [1, 0, 0], sizes = [10, 16, 4], strides = [1, 1, 1]} : vector<12x18x4xf32> to vector<10x16x4xf32>
    %9 = vector.extract_strided_slice %4 {offsets = [1, 1, 0], sizes = [10, 16, 4], strides = [1, 1, 1]} : vector<12x18x4xf32> to vector<10x16x4xf32>
    %10 = vector.extract_strided_slice %4 {offsets = [1, 2, 0], sizes = [10, 16, 4], strides = [1, 1, 1]} : vector<12x18x4xf32> to vector<10x16x4xf32>
    %11 = vector.extract_strided_slice %4 {offsets = [2, 0, 0], sizes = [10, 16, 4], strides = [1, 1, 1]} : vector<12x18x4xf32> to vector<10x16x4xf32>
    %12 = vector.extract_strided_slice %4 {offsets = [2, 1, 0], sizes = [10, 16, 4], strides = [1, 1, 1]} : vector<12x18x4xf32> to vector<10x16x4xf32>
    %13 = vector.extract_strided_slice %4 {offsets = [2, 2, 0], sizes = [10, 16, 4], strides = [1, 1, 1]} : vector<12x18x4xf32> to vector<10x16x4xf32>
    %14 = tpu.concatenate %5, %6, %7, %8, %9, %10, %11, %12, %13 in 2 : vector<10x16x4xf32>, vector<10x16x4xf32>, vector<10x16x4xf32>, vector<10x16x4xf32>, vector<10x16x4xf32>, vector<10x16x4xf32>, vector<10x16x4xf32>, vector<10x16x4xf32>, vector<10x16x4xf32> -> vector<10x16x36xf32>
    %15 = vector.shape_cast %14 : vector<10x16x36xf32> to vector<160x36xf32>
    %c0_2 = arith.constant 0 : index
    %c0_3 = arith.constant 0 : index
    %16 = vector.load %arg3[%c0_2, %c0_3] : memref<36x4xf32, #tpu.memory_space<vmem>>, vector<36x4xf32>
    %cst = arith.constant dense<0.000000e+00> : vector<160x4xf32>
    %17 = tpu.matmul %15, %16, %cst {dimension_numbers = #tpu.dot_dimension_numbers<[1], [0], [0], [1], [0, 0, 1, 1], [], []>} : vector<160x36xf32>, vector<36x4xf32>, vector<160x4xf32> -> vector<160x4xf32>
    %c0_4 = arith.constant 0 : index
    %c0_5 = arith.constant 0 : index
    %18 = vector.load %arg4[%c0_4, %c0_5] : memref<1x4xf32, #tpu.memory_space<vmem>>, vector<1x4xf32>
    %19 = vector.broadcast %18 : vector<1x4xf32> to vector<160x4xf32>
    %20 = arith.addf %17, %19 : vector<160x4xf32>
    %cst_6 = arith.constant 0.000000e+00 : f32
    %21 = vector.broadcast %cst_6 : f32 to vector<160x4xf32>
    %22 = arith.maximumf %20, %21 : vector<160x4xf32>
    %23 = vector.shape_cast %22 : vector<160x4xf32> to vector<10x16x4xf32>
    %cst_7 = arith.constant 0.000000e+00 : f32
    %24 = vector.broadcast %cst_7 : f32 to vector<10x1x4xf32>
    %c0_8 = arith.constant 0 : index
    %c0_9 = arith.constant 0 : index
    %c0_10 = arith.constant 0 : index
    %25 = vector.load %arg8[%c0_8, %c0_9, %c0_10] : memref<10x18x4xf32, #tpu.memory_space<vmem>>, vector<10x1x4xf32>
    tpu.vector_store %arg8[%c0_8, %c0_9, %c0_10], %24 {strides = array<i32>} : memref<10x18x4xf32, #tpu.memory_space<vmem>>, vector<10x1x4xf32>,
    %cst_11 = arith.constant 0.000000e+00 : f32
    %26 = vector.broadcast %cst_11 : f32 to vector<10x1x4xf32>
    %c0_12 = arith.constant 0 : index
    %c17 = arith.constant 17 : index
    %c0_13 = arith.constant 0 : index
    %27 = vector.load %arg8[%c0_12, %c17, %c0_13] : memref<10x18x4xf32, #tpu.memory_space<vmem>>, vector<10x1x4xf32>
    tpu.vector_store %arg8[%c0_12, %c17, %c0_13], %26 {strides = array<i32>} : memref<10x18x4xf32, #tpu.memory_space<vmem>>, vector<10x1x4xf32>,
    %c0_14 = arith.constant 0 : index
    %c1 = arith.constant 1 : index
    %c0_15 = arith.constant 0 : index
    %28 = vector.load %arg8[%c0_14, %c1, %c0_15] : memref<10x18x4xf32, #tpu.memory_space<vmem>>, vector<10x16x4xf32>
    tpu.vector_store %arg8[%c0_14, %c1, %c0_15], %23 {strides = array<i32>} : memref<10x18x4xf32, #tpu.memory_space<vmem>>, vector<10x16x4xf32>,
    %c0_i32 = arith.constant 0 : i32
    %29 = arith.cmpi eq, %arg1, %c0_i32 : i32
    %30 = arith.extui %29 : i1 to i32
    %c0_i32_16 = arith.constant 0 : i32
    %31 = arith.cmpi ne, %30, %c0_i32_16 : i32
    scf.if %31 {
      %cst_53 = arith.constant 0.000000e+00 : f32
      %56 = vector.broadcast %cst_53 : f32 to vector<1x18x4xf32>
      %c0_54 = arith.constant 0 : index
      %c0_55 = arith.constant 0 : index
      %c0_56 = arith.constant 0 : index
      %57 = vector.load %arg8[%c0_54, %c0_55, %c0_56] : memref<10x18x4xf32, #tpu.memory_space<vmem>>, vector<1x18x4xf32>
      tpu.vector_store %arg8[%c0_54, %c0_55, %c0_56], %56 {strides = array<i32>} : memref<10x18x4xf32, #tpu.memory_space<vmem>>, vector<1x18x4xf32>,
    } else {
    }
    %c1_i32 = arith.constant 1 : i32
    %32 = arith.cmpi eq, %arg1, %c1_i32 : i32
    %33 = arith.extui %32 : i1 to i32
    %c0_i32_17 = arith.constant 0 : i32
    %34 = arith.cmpi ne, %33, %c0_i32_17 : i32
    scf.if %34 {
      %cst_53 = arith.constant 0.000000e+00 : f32
      %56 = vector.broadcast %cst_53 : f32 to vector<1x18x4xf32>
      %c9 = arith.constant 9 : index
      %c0_54 = arith.constant 0 : index
      %c0_55 = arith.constant 0 : index
      %57 = vector.load %arg8[%c9, %c0_54, %c0_55] : memref<10x18x4xf32, #tpu.memory_space<vmem>>, vector<1x18x4xf32>
      tpu.vector_store %arg8[%c9, %c0_54, %c0_55], %56 {strides = array<i32>} : memref<10x18x4xf32, #tpu.memory_space<vmem>>, vector<1x18x4xf32>,
    } else {
    }
    %c0_18 = arith.constant 0 : index
    %c0_19 = arith.constant 0 : index
    %c0_20 = arith.constant 0 : index
    %35 = vector.load %arg8[%c0_18, %c0_19, %c0_20] : memref<10x18x4xf32, #tpu.memory_space<vmem>>, vector<8x16x4xf32>
    %c0_21 = arith.constant 0 : index
    %c1_22 = arith.constant 1 : index
    %c0_23 = arith.constant 0 : index
    %36 = vector.load %arg8[%c0_21, %c1_22, %c0_23] : memref<10x18x4xf32, #tpu.memory_space<vmem>>, vector<8x16x4xf32>
    %c0_24 = arith.constant 0 : index
    %c2 = arith.constant 2 : index
    %c0_25 = arith.constant 0 : index
    %37 = vector.load %arg8[%c0_24, %c2, %c0_25] : memref<10x18x4xf32, #tpu.memory_space<vmem>>, vector<8x16x4xf32>
    %c1_26 = arith.constant 1 : index
    %c0_27 = arith.constant 0 : index
    %c0_28 = arith.constant 0 : index
    %38 = vector.load %arg8[%c1_26, %c0_27, %c0_28] : memref<10x18x4xf32, #tpu.memory_space<vmem>>, vector<8x16x4xf32>
    %c1_29 = arith.constant 1 : index
    %c1_30 = arith.constant 1 : index
    %c0_31 = arith.constant 0 : index
    %39 = vector.load %arg8[%c1_29, %c1_30, %c0_31] : memref<10x18x4xf32, #tpu.memory_space<vmem>>, vector<8x16x4xf32>
    %c1_32 = arith.constant 1 : index
    %c2_33 = arith.constant 2 : index
    %c0_34 = arith.constant 0 : index
    %40 = vector.load %arg8[%c1_32, %c2_33, %c0_34] : memref<10x18x4xf32, #tpu.memory_space<vmem>>, vector<8x16x4xf32>
    %c2_35 = arith.constant 2 : index
    %c0_36 = arith.constant 0 : index
    %c0_37 = arith.constant 0 : index
    %41 = vector.load %arg8[%c2_35, %c0_36, %c0_37] : memref<10x18x4xf32, #tpu.memory_space<vmem>>, vector<8x16x4xf32>
    %c2_38 = arith.constant 2 : index
    %c1_39 = arith.constant 1 : index
    %c0_40 = arith.constant 0 : index
    %42 = vector.load %arg8[%c2_38, %c1_39, %c0_40] : memref<10x18x4xf32, #tpu.memory_space<vmem>>, vector<8x16x4xf32>
    %c2_41 = arith.constant 2 : index
    %c2_42 = arith.constant 2 : index
    %c0_43 = arith.constant 0 : index
    %43 = vector.load %arg8[%c2_41, %c2_42, %c0_43] : memref<10x18x4xf32, #tpu.memory_space<vmem>>, vector<8x16x4xf32>
    %44 = tpu.concatenate %35, %36, %37, %38, %39, %40, %41, %42, %43 in 2 : vector<8x16x4xf32>, vector<8x16x4xf32>, vector<8x16x4xf32>, vector<8x16x4xf32>, vector<8x16x4xf32>, vector<8x16x4xf32>, vector<8x16x4xf32>, vector<8x16x4xf32>, vector<8x16x4xf32> -> vector<8x16x36xf32>
    %45 = vector.shape_cast %44 : vector<8x16x36xf32> to vector<128x36xf32>
    %c0_44 = arith.constant 0 : index
    %c0_45 = arith.constant 0 : index
    %46 = vector.load %arg5[%c0_44, %c0_45] : memref<36x4xf32, #tpu.memory_space<vmem>>, vector<36x4xf32>
    %cst_46 = arith.constant dense<0.000000e+00> : vector<128x4xf32>
    %47 = tpu.matmul %45, %46, %cst_46 {dimension_numbers = #tpu.dot_dimension_numbers<[1], [0], [0], [1], [0, 0, 1, 1], [], []>} : vector<128x36xf32>, vector<36x4xf32>, vector<128x4xf32> -> vector<128x4xf32>
    %c0_47 = arith.constant 0 : index
    %c0_48 = arith.constant 0 : index
    %48 = vector.load %arg6[%c0_47, %c0_48] : memref<1x4xf32, #tpu.memory_space<vmem>>, vector<1x4xf32>
    %49 = vector.broadcast %48 : vector<1x4xf32> to vector<128x4xf32>
    %50 = arith.addf %47, %49 : vector<128x4xf32>
    %51 = vector.shape_cast %50 : vector<128x4xf32> to vector<8x16x4xf32>
    %52 = vector.extract_strided_slice %4 {offsets = [2, 1, 0], sizes = [8, 16, 4], strides = [1, 1, 1]} : vector<12x18x4xf32> to vector<8x16x4xf32>
    %53 = arith.addf %51, %52 : vector<8x16x4xf32>
    %54 = vector.shape_cast %53 : vector<8x16x4xf32> to vector<1x8x16x4xf32>
    %c0_49 = arith.constant 0 : index
    %c0_50 = arith.constant 0 : index
    %c0_51 = arith.constant 0 : index
    %c0_52 = arith.constant 0 : index
    %55 = vector.load %arg7[%c0_49, %c0_50, %c0_51, %c0_52] : memref<1x8x16x4xf32, #tpu.memory_space<vmem>>, vector<1x8x16x4xf32>
    tpu.vector_store %arg7[%c0_49, %c0_50, %c0_51, %c0_52], %54 {strides = array<i32>} : memref<1x8x16x4xf32, #tpu.memory_space<vmem>>, vector<1x8x16x4xf32>,
    return
  }
  func.func @transform_0(%arg0: i32, %arg1: i32) -> (i32, i32, i32, i32) {
    %c0_i32 = arith.constant 0 : i32
    %c0_i32_0 = arith.constant 0 : i32
    %c0_i32_1 = arith.constant 0 : i32
    %c0_i32_2 = arith.constant 0 : i32
    return %arg0, %c0_i32, %c0_i32_0, %c0_i32_1 : i32, i32, i32, i32
  }
  func.func @transform_1(%arg0: i32, %arg1: i32) -> (i32, i32) {
    %c0_i32 = arith.constant 0 : i32
    %c0_i32_0 = arith.constant 0 : i32
    %c0_i32_1 = arith.constant 0 : i32
    return %c0_i32, %c0_i32_0 : i32, i32
  }
  func.func @transform_2(%arg0: i32, %arg1: i32) -> (i32, i32) {
    %c0_i32 = arith.constant 0 : i32
    %c0_i32_0 = arith.constant 0 : i32
    %c0_i32_1 = arith.constant 0 : i32
    return %c0_i32, %c0_i32_0 : i32, i32
  }
  func.func @transform_3(%arg0: i32, %arg1: i32) -> (i32, i32) {
    %c0_i32 = arith.constant 0 : i32
    %c0_i32_0 = arith.constant 0 : i32
    %c0_i32_1 = arith.constant 0 : i32
    return %c0_i32, %c0_i32_0 : i32, i32
  }
  func.func @transform_4(%arg0: i32, %arg1: i32) -> (i32, i32) {
    %c0_i32 = arith.constant 0 : i32
    %c0_i32_0 = arith.constant 0 : i32
    %c0_i32_1 = arith.constant 0 : i32
    return %c0_i32, %c0_i32_0 : i32, i32
  }
  func.func @transform_5(%arg0: i32, %arg1: i32) -> (i32, i32, i32, i32) {
    %c0_i32 = arith.constant 0 : i32
    %c0_i32_0 = arith.constant 0 : i32
    %c0_i32_1 = arith.constant 0 : i32
    return %arg0, %arg1, %c0_i32, %c0_i32_0 : i32, i32, i32, i32
  }
}

</mosaic_0001>

<bundles_post_ra>
// kernel: residual_block_pallas.1
= control target key start
LH: loop header
LB: loop body
LE: loop exit
PB: predicated region body
PF: predicated region fallthrough
CT: control target
= control target key end

     0   :  { %s2874_s18 = smov 0   ;;  %s2876_s19 = smov 0   ;;  %s4277_s0 = inlined_call_operand.vmem [shape: f32[2,20,18,4], index: 0, kind: input, shape index: {}]   ;;  %s4278_s1 = inlined_call_operand.vmem [shape: f32[36,4], index: 1, kind: input, shape index: {}]   ;;  %s4279_s2 = inlined_call_operand.vmem [shape: f32[1,4], index: 2, kind: input, shape index: {}]   ;;  %s4280_s3 = inlined_call_operand.vmem [shape: f32[36,4], index: 3, kind: input, shape index: {}]   ;;  %s4281_s4 = inlined_call_operand.vmem [shape: f32[1,4], index: 4, kind: input, shape index: {}]   ;;  %s4282_s5 = inlined_call_operand.vmem [shape: f32[2,16,16,4], index: 5, kind: output, shape index: {}]  }
   0x1   :  { %s2878_s20 = smov 0   ;;  %s2880_s21 = smov 0  }
   0x2   :  { %s2882_s22 = smov 0  }
   0x3 LB: > { %s24_s23 = sadd.s32 1, %s2823_s20  ;;  %s27_s24 = sadd.s32 1, %s2827_s21  ;;  %s2831_s22 = sphi %s2882_s22, %s15_s22   ;;  %s2827_s21 = sphi %s2880_s21, %s4286_s21   ;;  %s2823_s20 = sphi %s2878_s20, %s4285_s20   ;;  %s2819_s19 = sphi %s2876_s19, %s4284_s19   ;;  %s2815_s18 = sphi %s2874_s18, %s4283_s18  }
   0x4   : > { %p25_p0 = scmp.ge.s32.totalorder %s24_s23, 2  ;;  %p2553_p1 = scmp.ge.s32.totalorder %s2831_s22, 1 }
   0x5   : > { %p201_p2 = scmp.lt.s32.totalorder %s2831_s22, 5 }
   0x6   : > { %s4288_s23 = smov (%p25_p0, %s24_s23), 0  ;;  %s4290_s24 = smov (!%p25_p0, %s27_s24), %s2827_s21 }
   0x7   : > { %p202_p3 = pnand %p2553_p1, %p201_p2  ;;  %p29_p4 = scmp.ge.s32.totalorder %s4290_s24, 2 }
   0x8   : > { %p234_p5 = scmp.lt.s32.totalorder (!%p202_p3), %s2819_s19, 1  ;;  %s2555_s25 = sshll.u32 (!%p202_p3), %s2815_s18, 3  ;;  %vm430_vm0 = vcmask (!%p202_p3), 1045504   ;;  %vm319_vm1 = vcmask (!%p202_p3), 1046528   ;;  %v1095_v28 = vld [vmem:[%s4278_s1] sm:$0xff] (!%p202_p3)  ;;  %v1096_v29 = vld [vmem:[%s4278_s1 + $0x8] sm:$0xff] (!%p202_p3) }
   0x9   : > { %s4292_s24 = smov (%p29_p4, %s4290_s24), 0  ;;  %205 = sbr.rel (%p202_p3) target bundleno = 1271 (0x4f7), region = 40 }
   0xa   : > { %p242_p6 = scmp.lt.s32.totalorder (!%p202_p3), %s2555_s25, 15  ;;  %s2560_s26 = smul.u32 (!%p202_p3), 192, %s2815_s18  ;;  %v2725_v30 = vpack.c.bf16 (!%p202_p3), %v1096_v29, %v1095_v28  ;;  %v1097_v33 = vld [vmem:[%s4278_s1 + $0x10] sm:$0xff] (!%p202_p3)  ;;  %v1098_v34 = vld [vmem:[%s4278_s1 + $0x18] sm:$0xff] (!%p202_p3)  ;;  %v1099_v38 = vld [vmem:[%s4278_s1 + $0x20] sm:$0xf] (!%p202_p3) }
   0xb   : > { %s2833_s14 = smov (!%p202_p3), 12   ;;  %s2834_s15 = smov (!%p202_p3), 8   ;;  %v2729_v36 = vpack.c.bf16 (!%p202_p3), %v1098_v34, %v1097_v33  ;;  %vm1168_vm2 = vcmask (!%p202_p3), 1043456   ;;  %vm927_vm3 = vcmask (!%p202_p3), 31744   ;;  %vm948_vm4 = vcmask (!%p202_p3), 64512  }
   0xc   : > { %s2835_s16 = smov (!%p202_p3), 4   ;;  %s2836_s17 = smov (!%p202_p3), 16   ;;  %2726 = vmatprep.subr.bf16.mxu0 (!%p202_p3), %v2725_v30  ;;  %vm969_vm5 = vcmask (!%p202_p3), 97280   ;;  %vm990_vm6 = vcmask (!%p202_p3), 130048   ;;  %vm1011_vm7 = vcmask (!%p202_p3), 162816   ;;  %vm1032_vm8 = vcmask (!%p202_p3), 195584  }
   0xd   : > { %2728 = vmatpush3.bf16.msra.mxu0 (!%p202_p3), %v2725_v30  ;;  %vm1053_vm9 = vcmask (!%p202_p3), 228352   ;;  %vm1074_vm10 = vcmask (!%p202_p3), 261120   ;;  %vm1107_vm11 = vcmask (!%p202_p3), 293888   ;;  %vm1357_vm12 = vcmask (!%p202_p3), 24576   ;;  %p2583_p7 = scmp.ne.s32.totalorder (!%p202_p3), %s2815_s18, 0 }
   0xe   : > { %2730 = vmatprep.subr.bf16.mxu0 (!%p202_p3), %v2729_v36 }
  0x10   : > { %s4294_s19 = smov (!%p234_p5, %s2819_s19), 1  ;;  %s4296_s25 = smov (!%p242_p6, %s2555_s25), 15 }
  0x11   : > { %s2741_s27 = smul.u32 480, %s4294_s19  ;;  %s2557_s28 = sshll.u32 %s4294_s19, 5  ;;  %2732 = vmatpush3.bf16.msra.mxu0 %v2729_v36  ;;  %vm1404_vm13 = vcmask (!%p2583_p7), 25600  }
  0x12   : > { %s2556_s29 = sshll.u32 %s4296_s25, 1  ;;  %s2837_s19 = smov 20   ;;  %2659 = vmatprep.subr.msk.mxu0 %vm1168_vm2, %v1099_v38 }
  0x13   : > { %s238_s7 = scalar_lea.vmem %s4277_s0, %s2741_s27  ;;  %s246_s8 = sadd.s32 %s2557_s28, %s2556_s29 }
  0x14   : > { %s2558_s9 = sshll.u32 %s246_s8, 3  ;;  %s2911_s10 = scalar_lea.vmem %s238_s7, %s2560_s26 }
  0x15   : > { %s2916_s13 = scalar_lea.vmem %s4282_s5, %s2558_s9  ;;  %v2919_v0 = vld [vmem:[%s2911_s10 + $0x20] sm:$0xff]  ;;  %v2922_v1 = vld [vmem:[%s2911_s10 + $0x18] sm:$0xff]  ;;  %v2932_v3 = vld [vmem:[%s2911_s10 + $0x8] sm:$0xff]  ;;  %s2838_s29 = smov 24   ;;  %2660 = vmatpush3.msk.msra.mxu0 %vm1168_vm2, %v1099_v38 }
  0x16   : > { %v2925_v2 = vld [vmem:[%s2911_s10] sm:$0xff]  ;;  %545 = vrot.lane.b32.xlu1 %v2919_v0, %s2833_s14  ;;  %543 = vrot.lane.b32.xlu0 %v2922_v1, %s2833_s14  ;;  %v255_v6 = vld [vmem:[%s2911_s10 + $0x10] sm:$0x3]  ;;  %v432_v7 = vrot.slane %v2932_v3, 2  ;;  %v321_v8 = vrot.slane %v2932_v3, 1  ;;  %v325_v15 = vrot.slane %v2922_v1, 1 }
  0x17   : > { %v431_v4 = vrot.slane %v2925_v2, 2  ;;  %v320_v5 = vrot.slane %v2925_v2, 1  ;;  %v434_v9 = vrot.slane %v255_v6, 2  ;;  %v323_v10 = vrot.slane %v255_v6, 1  ;;  %v258_v17 = vld [vmem:[%s2911_s10 + $0x28] sm:$0x3] }
  0x18   : > { %v326_v16 = vrot.slane %v2919_v0, 1  ;;  %v436_v19 = vrot.slane %v2922_v1, 2  ;;  %v437_v20 = vrot.slane %v2919_v0, 2  ;;  %v328_v21 = vrot.slane %v258_v17, 1  ;;  %v2962_v25 = vld [vmem:[%s2911_s10 + $0x30] sm:$0xff]  ;;  %v2966_v27 = vld [vmem:[%s2911_s10 + $0x38] sm:$0xff] }
  0x19   : > { %v433_v11 = vsel %vm430_vm0, %v431_v4, %v432_v7  ;;  %v322_v12 = vsel %vm319_vm1, %v320_v5, %v321_v8  ;;  %v435_v13 = vsel %vm430_vm0, %v432_v7, %v434_v9  ;;  %v324_v14 = vsel %vm319_vm1, %v321_v8, %v323_v10  ;;  %v261_v37 = vld [vmem:[%s2911_s10 + $0x40] sm:$0x3]  ;;  %s2839_s9 = smov 28   ;;  %s2840_s25 = smov 32   ;;  %v3025_v46 = vld [vmem:[%s2911_s10 + $0x48] sm:$0xff]  ;;  %v3028_v47 = vld [vmem:[%s2911_s10 + $0x50] sm:$0xff] }
  0x1a   : > { %481 = vrot.lane.b32.xlu1 %v433_v11, %s2834_s15  ;;  %370 = vrot.lane.b32.xlu0 %v322_v12, %s2835_s16  ;;  %v327_v18 = vsel %vm319_vm1, %v325_v15, %v326_v16  ;;  %v438_v22 = vsel %vm430_vm0, %v436_v19, %v437_v20  ;;  %v329_v23 = vsel %vm319_vm1, %v326_v16, %v328_v21  ;;  %v439_v24 = vrot.slane %v258_v17, 2  ;;  %v264_v51 = vld [vmem:[%s2911_s10 + $0x58] sm:$0x3]  ;;  %v3070_v59 = vld [vmem:[%s2911_s10 + $0x60] sm:$0xff] }
  0x1b   : > { %v330_v31 = vrot.slane %v2962_v25, 1  ;;  %v331_v32 = vrot.slane %v2966_v27, 1  ;;  %v441_v39 = vrot.slane %v2962_v25, 2  ;;  %v442_v40 = vrot.slane %v2966_v27, 2  ;;  %v3073_v60 = vld [vmem:[%s2911_s10 + $0x68] sm:$0xff]  ;;  %v3120_v17 = vld [vmem:[%s2911_s10 + $0x80] sm:$0xff] }
  0x1c   : > { %v440_v26 = vsel %vm430_vm0, %v437_v20, %v439_v24  ;;  %v333_v41 = vrot.slane %v261_v37, 1  ;;  %v444_v44 = vrot.slane %v261_v37, 2  ;;  %v335_v48 = vrot.slane %v3025_v46, 1  ;;  %v267_v4 = vld [vmem:[%s2911_s10 + $0x70] sm:$0x3] }
  0x1d   : > { %v2989_v35 = vsel %vm319_vm1, %v330_v31, %v331_v32  ;;  %v443_v42 = vsel %vm430_vm0, %v441_v39, %v442_v40  ;;  %v336_v49 = vrot.slane %v3028_v47, 1  ;;  %v446_v52 = vrot.slane %v3025_v46, 2 }
  0x1e   : > { %483 = vrot.lane.b32.xlu1 %v435_v13, %s2834_s15  ;;  %372 = vrot.lane.b32.xlu0 %v324_v14, %s2835_s16  ;;  %v3008_v43 = vsel %vm319_vm1, %v331_v32, %v333_v41  ;;  %v445_v45 = vsel %vm430_vm0, %v442_v40, %v444_v44  ;;  %v447_v53 = vrot.slane %v3028_v47, 2  ;;  %v338_v54 = vrot.slane %v264_v51, 1  ;;  %v3117_v14 = vld [vmem:[%s2911_s10 + $0x78] sm:$0xff] }
  0x1f   : > { %v3039_v50 = vsel %vm319_vm1, %v335_v48, %v336_v49  ;;  %v449_v57 = vrot.slane %v264_v51, 2  ;;  %v340_v61 = vrot.slane %v3070_v59, 1  ;;  %v341_v62 = vrot.slane %v3073_v60, 1 }
  0x20   : > { %v448_v55 = vsel %vm430_vm0, %v446_v52, %v447_v53  ;;  %v3054_v56 = vsel %vm319_vm1, %v336_v49, %v338_v54  ;;  %v451_v5 = vrot.slane %v3070_v59, 2  ;;  %v452_v6 = vrot.slane %v3073_v60, 2  ;;  %v3177_v52 = vld [vmem:[%s2911_s10 + $0x90] sm:$0xff] }
  0x21   : > { %v450_v58 = vsel %vm430_vm0, %v447_v53, %v449_v57  ;;  %v3084_v63 = vsel %vm319_vm1, %v340_v61, %v341_v62  ;;  %v343_v7 = vrot.slane %v267_v4, 1  ;;  %v454_v10 = vrot.slane %v267_v4, 2 }
  0x22   : > { %374 = vrot.lane.b32.xlu1 %v327_v18, %s2835_s16  ;;  %609 = vrot.lane.b32.xlu0 %v327_v18, %s2836_s17  ;;  %v453_v8 = vsel %vm430_vm0, %v451_v5, %v452_v6  ;;  %v345_v18 = vrot.slane %v3117_v14, 1  ;;  %v346_v19 = vrot.slane %v3120_v17, 1  ;;  %v456_v28 = vrot.slane %v3117_v14, 2 }
  0x23   : > { %v3099_v9 = vsel %vm319_vm1, %v341_v62, %v343_v7  ;;  %v455_v11 = vsel %vm430_vm0, %v452_v6, %v454_v10  ;;  %v457_v29 = vrot.slane %v3120_v17, 2  ;;  %v350_v4 = vrot.slane %v3177_v52, 1 }
  0x25   : > { %v458_v33 = vsel %vm430_vm0, %v456_v28, %v457_v29 }
  0x26   : > { %674 = vrot.lane.b32.xlu1 %v438_v22, %s2837_s19  ;;  %611 = vrot.lane.b32.xlu0 %v329_v23, %s2836_s17 }
  0x2a   : > { %485 = vrot.lane.b32.xlu1 %v438_v22, %s2834_s15  ;;  %376 = vrot.lane.b32.xlu0 %v329_v23, %s2835_s16  ;;  %v3133_v22 = vsel %vm319_vm1, %v345_v18, %v346_v19  ;;  %v273_v18 = vld [vmem:[%s2911_s10 + $0xa0] sm:$0x3] }
  0x2e   : > { %736 = vrot.lane.b32.xlu1 %v2962_v25, %s2838_s29  ;;  %676 = vrot.lane.b32.xlu0 %v440_v26, %s2837_s19 }
  0x32   : > { %547 = vrot.lane.b32.xlu1 %v2962_v25, %s2833_s14  ;;  %487 = vrot.lane.b32.xlu0 %v440_v26, %s2834_s15  ;;  %v270_v26 = vld [vmem:[%s2911_s10 + $0x88] sm:$0x3] }
  0x33   : > { %v348_v30 = vrot.slane %v270_v26, 1  ;;  %v459_v38 = vrot.slane %v270_v26, 2  ;;  %v353_v26 = vrot.slane %v273_v18, 1 }
  0x35   : > { %v3150_v34 = vsel %vm319_vm1, %v346_v19, %v348_v30  ;;  %v460_v41 = vsel %vm430_vm0, %v457_v29, %v459_v38 }
  0x36   : > { %802 = vrot.lane.b32.xlu1 %v2989_v35, %s2839_s9  ;;  %738 = vrot.lane.b32.xlu0 %v2966_v27, %s2838_s29 }
  0x3a   : > { %613 = vrot.lane.b32.xlu1 %v2989_v35, %s2836_s17  ;;  %549 = vrot.lane.b32.xlu0 %v2966_v27, %s2833_s14 }
  0x3e   : > { %867 = vrot.lane.b32.xlu1 %v443_v42, %s2840_s25  ;;  %804 = vrot.lane.b32.xlu0 %v3008_v43, %s2839_s9 }
  0x42   : > { %615 = vrot.lane.b32.xlu1 %v3008_v43, %s2836_s17  ;;  %378 = vrot.lane.b32.xlu0 %v2989_v35, %s2835_s16 }
  0x46   : > { %869 = vrot.lane.b32.xlu1 %v445_v45, %s2840_s25  ;;  %678 = vrot.lane.b32.xlu0 %v443_v42, %s2837_s19 }
  0x4a   : > { %489 = vrot.lane.b32.xlu1 %v443_v42, %s2834_s15  ;;  %380 = vrot.lane.b32.xlu0 %v3008_v43, %s2835_s16 }
  0x4e   : > { %740 = vrot.lane.b32.xlu1 %v3025_v46, %s2838_s29  ;;  %680 = vrot.lane.b32.xlu0 %v445_v45, %s2837_s19 }
  0x52   : > { %551 = vrot.lane.b32.xlu1 %v3025_v46, %s2833_s14  ;;  %491 = vrot.lane.b32.xlu0 %v445_v45, %s2834_s15 }
  0x56   : > { %806 = vrot.lane.b32.xlu1 %v3039_v50, %s2839_s9  ;;  %742 = vrot.lane.b32.xlu0 %v3028_v47, %s2838_s29 }
  0x5a   : > { %617 = vrot.lane.b32.xlu1 %v3039_v50, %s2836_s17  ;;  %553 = vrot.lane.b32.xlu0 %v3028_v47, %s2833_s14 }
  0x5e   : > { %871 = vrot.lane.b32.xlu1 %v448_v55, %s2840_s25  ;;  %808 = vrot.lane.b32.xlu0 %v3054_v56, %s2839_s9 }
  0x62   : > { %619 = vrot.lane.b32.xlu1 %v3054_v56, %s2836_s17  ;;  %382 = vrot.lane.b32.xlu0 %v3039_v50, %s2835_s16 }
  0x66   : > { %873 = vrot.lane.b32.xlu1 %v450_v58, %s2840_s25  ;;  %682 = vrot.lane.b32.xlu0 %v448_v55, %s2837_s19 }
  0x6a   : > { %493 = vrot.lane.b32.xlu1 %v448_v55, %s2834_s15  ;;  %384 = vrot.lane.b32.xlu0 %v3054_v56, %s2835_s16  ;;  %v3185_v55 = vld [vmem:[%s2911_s10 + $0x98] sm:$0xff] }
  0x6b   : > { %v351_v5 = vrot.slane %v3185_v55, 1 }
  0x6e   : > { %744 = vrot.lane.b32.xlu1 %v3070_v59, %s2838_s29  ;;  %684 = vrot.lane.b32.xlu0 %v450_v58, %s2837_s19 }
  0x72   : > { %555 = vrot.lane.b32.xlu1 %v3070_v59, %s2833_s14  ;;  %495 = vrot.lane.b32.xlu0 %v450_v58, %s2834_s15 }
  0x76   : > { %810 = vrot.lane.b32.xlu1 %v3084_v63, %s2839_s9  ;;  %746 = vrot.lane.b32.xlu0 %v3073_v60, %s2838_s29 }
  0x7a   : > { %621 = vrot.lane.b32.xlu1 %v3084_v63, %s2836_s17  ;;  %557 = vrot.lane.b32.xlu0 %v3073_v60, %s2833_s14 }
  0x7e   : > { %875 = vrot.lane.b32.xlu1 %v453_v8, %s2840_s25  ;;  %812 = vrot.lane.b32.xlu0 %v3099_v9, %s2839_s9 }
  0x82   : > { %623 = vrot.lane.b32.xlu1 %v3099_v9, %s2836_s17  ;;  %386 = vrot.lane.b32.xlu0 %v3084_v63, %s2835_s16 }
  0x86   : > { %877 = vrot.lane.b32.xlu1 %v455_v11, %s2840_s25  ;;  %686 = vrot.lane.b32.xlu0 %v453_v8, %s2837_s19 }
  0x88   : > { %v3111_v12 = vpop.permute.xlu1 %545  ;;  %v544_v13 = vpop.permute.xlu0 %543 }
  0x8a   : > { %497 = vrot.lane.b32.xlu1 %v453_v8, %s2834_s15  ;;  %388 = vrot.lane.b32.xlu0 %v3099_v9, %s2835_s16 }
  0x8c   : > { %v482_v15 = vpop.permute.xlu1 %481  ;;  %v371_v16 = vpop.permute.xlu0 %370 }
  0x8d   : > { %v928_v45 = vsel %vm927_vm3, %v2925_v2, %v371_v16 }
  0x8e   : > { %748 = vrot.lane.b32.xlu1 %v3117_v14, %s2838_s29  ;;  %688 = vrot.lane.b32.xlu0 %v455_v11, %s2837_s19  ;;  %v949_v51 = vsel %vm948_vm4, %v928_v45, %v482_v15 }
  0x8f   : > { %v970_v2 = vsel %vm969_vm5, %v949_v51, %v544_v13 }
  0x90   : > { %v3127_v20 = vpop.permute.xlu1 %483  ;;  %v373_v21 = vpop.permute.xlu0 %372 }
  0x91   : > { %v929_v58 = vsel %vm927_vm3, %v2932_v3, %v373_v21 }
  0x92   : > { %559 = vrot.lane.b32.xlu1 %v3117_v14, %s2833_s14  ;;  %499 = vrot.lane.b32.xlu0 %v455_v11, %s2834_s15  ;;  %v950_v3 = vsel %vm948_vm4, %v929_v58, %v3127_v20  ;;  %v3206_v11 = vsel %vm319_vm1, %v350_v4, %v351_v5 }
  0x93   : > { %v971_v13 = vsel %vm969_vm5, %v950_v3, %v3111_v12  ;;  %v462_v12 = vrot.slane %v3185_v55, 2 }
  0x94   : > { %v3135_v23 = vpop.permute.xlu1 %374  ;;  %v610_v24 = vpop.permute.xlu0 %609 }
  0x95   : > { %v991_v57 = vsel %vm990_vm6, %v970_v2, %v610_v24  ;;  %v461_v24 = vrot.slane %v3177_v52, 2  ;;  %v930_v58 = vsel %vm927_vm3, %v2922_v1, %v3135_v23 }
  0x96   : > { %814 = vrot.lane.b32.xlu1 %v3133_v22, %s2839_s9  ;;  %750 = vrot.lane.b32.xlu0 %v3120_v17, %s2838_s29 }
  0x98   : > { %v675_v31 = vpop.permute.xlu1 %674  ;;  %v612_v32 = vpop.permute.xlu0 %611 }
  0x99   : > { %v1012_v61 = vsel %vm1011_vm7, %v991_v57, %v675_v31  ;;  %v992_v19 = vsel %vm990_vm6, %v971_v13, %v612_v32  ;;  %v463_v32 = vsel %vm430_vm0, %v461_v24, %v462_v12 }
  0x9a   : > { %625 = vrot.lane.b32.xlu1 %v3133_v22, %s2836_s17  ;;  %561 = vrot.lane.b32.xlu0 %v3120_v17, %s2833_s14 }
  0x9c   : > { %v3152_v36 = vpop.permute.xlu1 %485  ;;  %v3154_v37 = vpop.permute.xlu0 %376 }
  0x9e   : > { %879 = vrot.lane.b32.xlu1 %v458_v33, %s2840_s25  ;;  %816 = vrot.lane.b32.xlu0 %v3150_v34, %s2839_s9 }
  0xa0   : > { %v737_v39 = vpop.permute.xlu1 %736  ;;  %v677_v40 = vpop.permute.xlu0 %676 }
  0xa1   : > { %v1033_v62 = vsel %vm1032_vm8, %v1012_v61, %v737_v39  ;;  %v1013_v20 = vsel %vm1011_vm7, %v992_v19, %v677_v40  ;;  %v464_v40 = vrot.slane %v273_v18, 2  ;;  %v951_v61 = vsel %vm948_vm4, %v930_v58, %v3152_v36 }
  0xa2   : > { %627 = vrot.lane.b32.xlu1 %v3150_v34, %s2836_s17  ;;  %390 = vrot.lane.b32.xlu0 %v3133_v22, %s2835_s16  ;;  %v931_v18 = vsel %vm927_vm3, %v2919_v0, %v3154_v37  ;;  %v276_v0 = vld [vmem:[%s2911_s10 + $0xb8] sm:$0x3] }
  0xa4   : > { %v3164_v42 = vpop.permute.xlu1 %547  ;;  %v3166_v44 = vpop.permute.xlu0 %487 }
  0xa5   : > { %v972_v4 = vsel %vm969_vm5, %v951_v61, %v3164_v42  ;;  %v952_v19 = vsel %vm948_vm4, %v931_v18, %v3166_v44  ;;  %v3360_v18 = vld [vmem:[%s2911_s10 + $0xc8] sm:$0xff] }
  0xa6   : > { %881 = vrot.lane.b32.xlu1 %v460_v41, %s2840_s25  ;;  %690 = vrot.lane.b32.xlu0 %v458_v33, %s2837_s19 }
  0xa8   : > { %v803_v48 = vpop.permute.xlu1 %802  ;;  %v739_v49 = vpop.permute.xlu0 %738 }
  0xa9   : > { %v1054_v6 = vsel %vm1053_vm9, %v1033_v62, %v803_v48  ;;  %v1034_v21 = vsel %vm1032_vm8, %v1013_v20, %v739_v49  ;;  %v465_v48 = vsel %vm430_vm0, %v462_v12, %v464_v40  ;;  %v3262_v62 = vld [vmem:[%s2911_s10 + $0xa8] sm:$0xff] }
  0xaa   : > { %501 = vrot.lane.b32.xlu1 %v458_v33, %s2834_s15  ;;  %392 = vrot.lane.b32.xlu0 %v3150_v34, %s2835_s16  ;;  %v3233_v33 = vsel %vm319_vm1, %v351_v5, %v353_v26  ;;  %v355_v42 = vrot.slane %v3262_v62, 1 }
  0xac   : > { %v3180_v53 = vpop.permute.xlu1 %613  ;;  %v3182_v54 = vpop.permute.xlu0 %549 }
  0xad   : > { %v993_v1 = vsel %vm990_vm6, %v972_v4, %v3180_v53 }
  0xae   : > { %752 = vrot.lane.b32.xlu1 %v3177_v52, %s2838_s29  ;;  %692 = vrot.lane.b32.xlu0 %v460_v41, %s2837_s19 }
  0xb0   : > { %v868_v7 = vpop.permute.xlu1 %867  ;;  %v805_v8 = vpop.permute.xlu0 %804 }
  0xb1   : > { %v1075_v10 = vsel %vm1074_vm10, %v1054_v6, %v868_v7  ;;  %v1055_v28 = vsel %vm1053_vm9, %v1034_v21, %v805_v8  ;;  %v3271_v7 = vld [vmem:[%s2911_s10 + $0xb0] sm:$0xff]  ;;  %v973_v21 = vsel %vm969_vm5, %v952_v19, %v3182_v54  ;;  %v466_v54 = vrot.slane %v3262_v62, 2 }
  0xb2   : > { %563 = vrot.lane.b32.xlu1 %v3177_v52, %s2833_s14  ;;  %503 = vrot.lane.b32.xlu0 %v460_v41, %s2834_s15  ;;  %v356_v8 = vrot.slane %v3271_v7, 1  ;;  %v361_v19 = vrot.slane %v3360_v18, 1 }
  0xb3   : > { %2661 = vmatprep.mubr.msk.f32.mxu0 %vm1107_vm11, %v1075_v10 }
  0xb4   : > { %v3210_v15 = vpop.permute.xlu1 %615  ;;  %v3212_v16 = vpop.permute.xlu0 %378  ;;  %v3294_v20 = vsel %vm319_vm1, %v355_v42, %v356_v8 }
  0xb5   : > { %v994_v37 = vsel %vm990_vm6, %v973_v21, %v3210_v15  ;;  %v932_v42 = vsel %vm927_vm3, %v2962_v25, %v3212_v16 }
  0xb6   : > { %818 = vrot.lane.b32.xlu1 %v3206_v11, %s2839_s9  ;;  %754 = vrot.lane.b32.xlu0 %v3185_v55, %s2838_s29 }
  0xb8   : > { %v870_v29 = vpop.permute.xlu1 %869  ;;  %v679_v30 = vpop.permute.xlu0 %678 }
  0xb9   : > { %v1076_v31 = vsel %vm1074_vm10, %v1055_v28, %v870_v29  ;;  %v1014_v23 = vsel %vm1011_vm7, %v993_v1, %v679_v30  ;;  %v467_v28 = vrot.slane %v3271_v7, 2  ;;  %v358_v29 = vrot.slane %v276_v0, 1 }
  0xba   : > { %629 = vrot.lane.b32.xlu1 %v3206_v11, %s2836_s17  ;;  %565 = vrot.lane.b32.xlu0 %v3185_v55, %s2833_s14 }
  0xbb   : > { %2662 = vmatmul.mubr.msk.f32.vlgmr.msra.gmra.mrb[0].mxu0 %vm1107_vm11, %v1076_v31  ;;  %v468_v40 = vsel %vm430_vm0, %v466_v54, %v467_v28 }
  0xbc   : > { %v3235_v38 = vpop.permute.xlu1 %489  ;;  %v3237_v39 = vpop.permute.xlu0 %380 }
  0xbe   : > { %883 = vrot.lane.b32.xlu1 %v463_v32, %s2840_s25  ;;  %820 = vrot.lane.b32.xlu0 %v3233_v33, %s2839_s9 }
  0xc0   : > { %v741_v41 = vpop.permute.xlu1 %740  ;;  %v681_v45 = vpop.permute.xlu0 %680 }
  0xc1   : > { %v1035_v36 = vsel %vm1032_vm8, %v1014_v23, %v741_v41  ;;  %v1015_v26 = vsel %vm1011_vm7, %v994_v37, %v681_v45  ;;  %v3322_v41 = vsel %vm319_vm1, %v356_v8, %v358_v29  ;;  %v953_v8 = vsel %vm948_vm4, %v932_v42, %v3235_v38 }
  0xc2   : > { %631 = vrot.lane.b32.xlu1 %v3233_v33, %s2836_s17  ;;  %394 = vrot.lane.b32.xlu0 %v3206_v11, %s2835_s16 }
  0xc4   : > { %v3247_v49 = vpop.permute.xlu1 %551  ;;  %v3249_v51 = vpop.permute.xlu0 %491 }
  0xc6   : > { %885 = vrot.lane.b32.xlu1 %v465_v48, %s2840_s25  ;;  %694 = vrot.lane.b32.xlu0 %v463_v32, %s2837_s19 }
  0xc8   : > { %v807_v2 = vpop.permute.xlu1 %806  ;;  %v743_v57 = vpop.permute.xlu0 %742 }
  0xc9   : > { %v1056_v3 = vsel %vm1053_vm9, %v1035_v36, %v807_v2  ;;  %v1036_v44 = vsel %vm1032_vm8, %v1015_v26, %v743_v57  ;;  %v469_v2 = vrot.slane %v276_v0, 2  ;;  %v933_v26 = vsel %vm927_vm3, %v2966_v27, %v3237_v39  ;;  %v279_v27 = vld [vmem:[%s2911_s10 + $0xd0] sm:$0x3] }
  0xca   : > { %505 = vrot.lane.b32.xlu1 %v463_v32, %s2834_s15  ;;  %396 = vrot.lane.b32.xlu0 %v3233_v33, %s2835_s16  ;;  %v474_v42 = vrot.slane %v279_v27, 2 }
  0xcb   : > { %v470_v61 = vsel %vm430_vm0, %v467_v28, %v469_v2 }
  0xcc   : > { %v3266_v5 = vpop.permute.xlu1 %617  ;;  %v3268_v6 = vpop.permute.xlu0 %553 }
  0xce   : > { %756 = vrot.lane.b32.xlu1 %v3262_v62, %s2838_s29  ;;  %696 = vrot.lane.b32.xlu0 %v465_v48, %s2837_s19 }
  0xd0   : > { %v872_v10 = vpop.permute.xlu1 %871  ;;  %v809_v13 = vpop.permute.xlu0 %808 }
  0xd1   : > { %v1077_v53 = vsel %vm1074_vm10, %v1056_v3, %v872_v10  ;;  %v1057_v30 = vsel %vm1053_vm9, %v1036_v44, %v809_v13  ;;  %v3351_v3 = vld [vmem:[%s2911_s10 + $0xc0] sm:$0xff]  ;;  %v974_v10 = vsel %vm969_vm5, %v953_v8, %v3247_v49  ;;  %v954_v44 = vsel %vm948_vm4, %v933_v26, %v3249_v51 }
  0xd2   : > { %567 = vrot.lane.b32.xlu1 %v3262_v62, %s2833_s14  ;;  %507 = vrot.lane.b32.xlu0 %v465_v48, %s2834_s15  ;;  %v995_v25 = vsel %vm990_vm6, %v974_v10, %v3266_v5  ;;  %v360_v49 = vrot.slane %v3351_v3, 1  ;;  %v975_v28 = vsel %vm969_vm5, %v954_v44, %v3268_v6  ;;  %v471_v6 = vrot.slane %v3351_v3, 2 }
  0xd3   : > { %2664 = vmatprep.mubr.msk.f32.mxu0 %vm1107_vm11, %v1077_v53 }
  0xd4   : > { %v3298_v24 = vpop.permute.xlu1 %619  ;;  %v3300_v12 = vpop.permute.xlu0 %382  ;;  %v3383_v54 = vsel %vm319_vm1, %v360_v49, %v361_v19 }
  0xd5   : > { %v996_v39 = vsel %vm990_vm6, %v975_v28, %v3298_v24  ;;  %v3449_v28 = vld [vmem:[%s2911_s10 + $0xe0] sm:$0xff] }
  0xd6   : > { %822 = vrot.lane.b32.xlu1 %v3294_v20, %s2839_s9  ;;  %758 = vrot.lane.b32.xlu0 %v3271_v7, %s2838_s29 }
  0xd8   : > { %v874_v31 = vpop.permute.xlu1 %873  ;;  %v683_v32 = vpop.permute.xlu0 %682 }
  0xd9   : > { %v1078_v15 = vsel %vm1074_vm10, %v1057_v30, %v874_v31  ;;  %v1016_v16 = vsel %vm1011_vm7, %v995_v25, %v683_v32  ;;  %v472_v32 = vrot.slane %v3360_v18, 2 }
  0xda   : > { %633 = vrot.lane.b32.xlu1 %v3294_v20, %s2836_s17  ;;  %569 = vrot.lane.b32.xlu0 %v3271_v7, %s2833_s14 }
  0xdb   : > { %2665 = vmatmul.mubr.msk.f32.gmra.mrb[2].mxu0 %vm1107_vm11, %v1078_v15  ;;  %v363_v15 = vrot.slane %v279_v27, 1  ;;  %v475_v25 = vsel %vm430_vm0, %v472_v32, %v474_v42  ;;  %v366_v27 = vrot.slane %v3449_v28, 1 }
  0xdc   : > { %v3324_v45 = vpop.permute.xlu1 %493  ;;  %v3326_v48 = vpop.permute.xlu0 %384 }
  0xde   : > { %887 = vrot.lane.b32.xlu1 %v468_v40, %s2840_s25  ;;  %824 = vrot.lane.b32.xlu0 %v3322_v41, %s2839_s9 }
  0xe0   : > { %v745_v57 = vpop.permute.xlu1 %744  ;;  %v685_v58 = vpop.permute.xlu0 %684 }
  0xe1   : > { %v1037_v38 = vsel %vm1032_vm8, %v1016_v16, %v745_v57  ;;  %v1017_v31 = vsel %vm1011_vm7, %v996_v39, %v685_v58  ;;  %v473_v58 = vsel %vm430_vm0, %v471_v6, %v472_v32  ;;  %v935_v6 = vsel %vm927_vm3, %v3028_v47, %v3326_v48  ;;  %v282_v47 = vld [vmem:[%s2911_s10 + $0xe8] sm:$0x3] }
  0xe2   : > { %635 = vrot.lane.b32.xlu1 %v3322_v41, %s2836_s17  ;;  %398 = vrot.lane.b32.xlu0 %v3294_v20, %s2835_s16  ;;  %v368_v42 = vrot.slane %v282_v47, 1 }
  0xe4   : > { %v3336_v4 = vpop.permute.xlu1 %555  ;;  %v3338_v1 = vpop.permute.xlu0 %495 }
  0xe5   : > { %v956_v32 = vsel %vm948_vm4, %v935_v6, %v3338_v1  ;;  %v283_v6 = vld [vmem:[%s2911_s10 + $0xf0] sm:$0xff] }
  0xe6   : > { %889 = vrot.lane.b32.xlu1 %v470_v61, %s2840_s25  ;;  %698 = vrot.lane.b32.xlu0 %v468_v40, %s2837_s19 }
  0xe8   : > { %v811_v23 = vpop.permute.xlu1 %810  ;;  %v747_v36 = vpop.permute.xlu0 %746 }
  0xe9   : > { %v1058_v21 = vsel %vm1053_vm9, %v1037_v38, %v811_v23  ;;  %v1038_v51 = vsel %vm1032_vm8, %v1017_v31, %v747_v36 }
  0xea   : > { %509 = vrot.lane.b32.xlu1 %v468_v40, %s2834_s15  ;;  %400 = vrot.lane.b32.xlu0 %v3322_v41, %s2835_s16 }
  0xec   : > { %v3355_v13 = vpop.permute.xlu1 %621  ;;  %v3357_v53 = vpop.permute.xlu0 %557 }
  0xee   : > { %760 = vrot.lane.b32.xlu1 %v3351_v3, %s2838_s29  ;;  %700 = vrot.lane.b32.xlu0 %v470_v61, %s2837_s19 }
  0xf0   : > { %v876_v0 = vpop.permute.xlu1 %875  ;;  %v813_v37 = vpop.permute.xlu0 %812 }
  0xf1   : > { %v1079_v5 = vsel %vm1074_vm10, %v1058_v21, %v876_v0  ;;  %v1059_v40 = vsel %vm1053_vm9, %v1038_v51, %v813_v37  ;;  %v934_v21 = vsel %vm927_vm3, %v3025_v46, %v3300_v12  ;;  %v3440_v37 = vld [vmem:[%s2911_s10 + $0xd8] sm:$0xff] }
  0xf2   : > { %571 = vrot.lane.b32.xlu1 %v3351_v3, %s2833_s14  ;;  %511 = vrot.lane.b32.xlu0 %v470_v61, %s2834_s15  ;;  %v3411_v61 = vsel %vm319_vm1, %v361_v19, %v363_v15  ;;  %v955_v0 = vsel %vm948_vm4, %v934_v21, %v3324_v45 }
  0xf3   : > { %2667 = vmatprep.mubr.msk.f32.mxu0 %vm1107_vm11, %v1079_v5  ;;  %v976_v5 = vsel %vm969_vm5, %v955_v0, %v3336_v4  ;;  %v365_v4 = vrot.slane %v3440_v37, 1 }
  0xf4   : > { %v3387_v29 = vpop.permute.xlu1 %623  ;;  %v3389_v30 = vpop.permute.xlu0 %386  ;;  %v997_v46 = vsel %vm990_vm6, %v976_v5, %v3355_v13  ;;  %v479_v5 = vrot.slane %v282_v47, 2 }
  0xf5   : > { %v3472_v15 = vsel %vm319_vm1, %v365_v4, %v366_v27 }
  0xf6   : > { %826 = vrot.lane.b32.xlu1 %v3383_v54, %s2839_s9  ;;  %762 = vrot.lane.b32.xlu0 %v3360_v18, %s2838_s29 }
  0xf8   : > { %v878_v2 = vpop.permute.xlu1 %877  ;;  %v687_v57 = vpop.permute.xlu0 %686 }
  0xf9   : > { %v1080_v24 = vsel %vm1074_vm10, %v1059_v40, %v878_v2  ;;  %v1018_v12 = vsel %vm1011_vm7, %v997_v46, %v687_v57  ;;  %v977_v40 = vsel %vm969_vm5, %v956_v32, %v3357_v53  ;;  %v476_v53 = vrot.slane %v3440_v37, 2 }
  0xfa   : > { %637 = vrot.lane.b32.xlu1 %v3383_v54, %s2836_s17  ;;  %573 = vrot.lane.b32.xlu0 %v3360_v18, %s2833_s14  ;;  %v998_v48 = vsel %vm990_vm6, %v977_v40, %v3387_v29 }
  0xfb   : > { %2668 = vmatmul.mubr.msk.f32.gmra.mrb[4].mxu0 %vm1107_vm11, %v1080_v24 }
  0xfc   : > { %v3413_v23 = vpop.permute.xlu1 %497  ;;  %v3415_v36 = vpop.permute.xlu0 %388 }
  0xfe   : > { %891 = vrot.lane.b32.xlu1 %v473_v58, %s2840_s25  ;;  %828 = vrot.lane.b32.xlu0 %v3411_v61, %s2839_s9 }
 0x100   : > { %v749_v8 = vpop.permute.xlu1 %748  ;;  %v689_v10 = vpop.permute.xlu0 %688 }
 0x101   : > { %v1039_v45 = vsel %vm1032_vm8, %v1018_v12, %v749_v8  ;;  %v1019_v24 = vsel %vm1011_vm7, %v998_v48, %v689_v10  ;;  %v284_v48 = vld [vmem:[%s2911_s10 + $0xf8] sm:$0xff] }
 0x102   : > { %639 = vrot.lane.b32.xlu1 %v3411_v61, %s2836_s17  ;;  %402 = vrot.lane.b32.xlu0 %v3383_v54, %s2835_s16 }
 0x104   : > { %v3425_v16 = vpop.permute.xlu1 %559  ;;  %v3427_v38 = vpop.permute.xlu0 %499 }
 0x106   : > { %893 = vrot.lane.b32.xlu1 %v475_v25, %s2840_s25  ;;  %702 = vrot.lane.b32.xlu0 %v473_v58, %s2837_s19 }
 0x108   : > { %v815_v49 = vpop.permute.xlu1 %814  ;;  %v751_v19 = vpop.permute.xlu0 %750 }
 0x109   : > { %v1060_v39 = vsel %vm1053_vm9, %v1039_v45, %v815_v49  ;;  %v1040_v1 = vsel %vm1032_vm8, %v1019_v24, %v751_v19  ;;  %v3500_v19 = vsel %vm319_vm1, %v366_v27, %v368_v42  ;;  %v604_v24 = vrot.slane %v283_v6, 1 }
 0x10a   : > { %513 = vrot.lane.b32.xlu1 %v473_v58, %s2834_s15  ;;  %404 = vrot.lane.b32.xlu0 %v3411_v61, %s2835_s16  ;;  %v477_v58 = vrot.slane %v3449_v28, 2 }
 0x10c   : > { %v3444_v26 = vpop.permute.xlu1 %625  ;;  %v3446_v44 = vpop.permute.xlu0 %561  ;;  %v478_v10 = vsel %vm430_vm0, %v476_v53, %v477_v58  ;;  %v480_v45 = vsel %vm430_vm0, %v477_v58, %v479_v5  ;;  %v285_v5 = vld [vmem:[%s2911_s10 + $0x100] sm:$0x3] }
 0x10e   : > { %764 = vrot.lane.b32.xlu1 %v3440_v37, %s2838_s29  ;;  %704 = vrot.lane.b32.xlu0 %v475_v25, %s2837_s19 }
 0x110   : > { %v880_v31 = vpop.permute.xlu1 %879  ;;  %v817_v51 = vpop.permute.xlu0 %816 }
 0x111   : > { %v1081_v13 = vsel %vm1074_vm10, %v1060_v39, %v880_v31  ;;  %v1061_v8 = vsel %vm1053_vm9, %v1040_v1, %v817_v51  ;;  %v936_v51 = vsel %vm927_vm3, %v3070_v59, %v3389_v30  ;;  %v605_v1 = vrot.slane %v284_v48, 1 }
 0x112   : > { %575 = vrot.lane.b32.xlu1 %v3440_v37, %s2833_s14  ;;  %515 = vrot.lane.b32.xlu0 %v475_v25, %s2834_s15 }
 0x113   : > { %2670 = vmatprep.mubr.msk.f32.mxu0 %vm1107_vm11, %v1081_v13  ;;  %v957_v13 = vsel %vm948_vm4, %v936_v51, %v3413_v23 }
 0x114   : > { %v3476_v2 = vpop.permute.xlu1 %627  ;;  %v3478_v57 = vpop.permute.xlu0 %390  ;;  %v978_v32 = vsel %vm969_vm5, %v957_v13, %v3425_v16 }
 0x115   : > { %v999_v59 = vsel %vm990_vm6, %v978_v32, %v3444_v26  ;;  %v937_v26 = vsel %vm927_vm3, %v3073_v60, %v3415_v36 }
 0x116   : > { %830 = vrot.lane.b32.xlu1 %v3472_v15, %s2839_s9  ;;  %766 = vrot.lane.b32.xlu0 %v3449_v28, %s2838_s29 }
 0x118   : > { %v882_v25 = vpop.permute.xlu1 %881  ;;  %v691_v49 = vpop.permute.xlu0 %690 }
 0x119   : > { %v1082_v29 = vsel %vm1074_vm10, %v1061_v8, %v882_v25  ;;  %v1020_v30 = vsel %vm1011_vm7, %v999_v59, %v691_v49  ;;  %v958_v8 = vsel %vm948_vm4, %v937_v26, %v3427_v38  ;;  %v606_v25 = vsel %vm319_vm1, %v604_v24, %v605_v1 }
 0x11a   : > { %641 = vrot.lane.b32.xlu1 %v3472_v15, %s2836_s17  ;;  %577 = vrot.lane.b32.xlu0 %v3449_v28, %s2833_s14  ;;  %v979_v49 = vsel %vm969_vm5, %v958_v8, %v3446_v44  ;;  %v672_v59 = vrot.slane %v285_v5, 2 }
 0x11b   : > { %2671 = vmatmul.mubr.msk.f32.gmra.mrb[6].mxu0 %vm1107_vm11, %v1082_v29  ;;  %v1000_v60 = vsel %vm990_vm6, %v979_v49, %v3476_v2 }
 0x11c   : > { %v3502_v21 = vpop.permute.xlu1 %501  ;;  %v3504_v0 = vpop.permute.xlu0 %392 }
 0x11e   : > { %895 = vrot.lane.b32.xlu1 %v478_v10, %s2840_s25  ;;  %832 = vrot.lane.b32.xlu0 %v3500_v19, %s2839_s9 }
 0x120   : > { %v753_v46 = vpop.permute.xlu1 %752  ;;  %v693_v12 = vpop.permute.xlu0 %692 }
 0x121   : > { %v1041_v23 = vsel %vm1032_vm8, %v1020_v30, %v753_v46  ;;  %v1021_v36 = vsel %vm1011_vm7, %v1000_v60, %v693_v12  ;;  %v669_v46 = vrot.slane %v283_v6, 2 }
 0x122   : > { %643 = vrot.lane.b32.xlu1 %v3500_v19, %s2836_s17  ;;  %406 = vrot.lane.b32.xlu0 %v3472_v15, %s2835_s16 }
 0x124   : > { %v3514_v4 = vpop.permute.xlu1 %563  ;;  %v3516_v27 = vpop.permute.xlu0 %503 }
 0x126   : > { %897 = vrot.lane.b32.xlu1 %v480_v45, %s2840_s25  ;;  %706 = vrot.lane.b32.xlu0 %v478_v10, %s2837_s19 }
 0x128   : > { %v819_v39 = vpop.permute.xlu1 %818  ;;  %v755_v31 = vpop.permute.xlu0 %754 }
 0x129   : > { %v1062_v16 = vsel %vm1053_vm9, %v1041_v23, %v819_v39  ;;  %v1042_v38 = vsel %vm1032_vm8, %v1021_v36, %v755_v31  ;;  %v607_v39 = vrot.slane %v285_v5, 1  ;;  %v938_v5 = vsel %vm927_vm3, %v3117_v14, %v3478_v57 }
 0x12a   : > { %517 = vrot.lane.b32.xlu1 %v478_v10, %s2834_s15  ;;  %408 = vrot.lane.b32.xlu0 %v3500_v19, %s2835_s16 }
 0x12b   : > { %v608_v12 = vsel %vm319_vm1, %v605_v1, %v607_v39  ;;  %v287_v1 = vld [vmem:[%s2911_s10 + $0x110] sm:$0xff] }
 0x12c   : > { %v3531_v40 = vpop.permute.xlu1 %629  ;;  %v3533_v47 = vpop.permute.xlu0 %565  ;;  %v863_v60 = vrot.slane %v287_v1, 2 }
 0x12e   : > { %768 = vrot.lane.b32.xlu1 %v283_v6, %s2838_s29  ;;  %708 = vrot.lane.b32.xlu0 %v480_v45, %s2837_s19 }
 0x130   : > { %v884_v53 = vpop.permute.xlu1 %883  ;;  %v821_v58 = vpop.permute.xlu0 %820 }
 0x131   : > { %v1083_v42 = vsel %vm1074_vm10, %v1062_v16, %v884_v53  ;;  %v1063_v44 = vsel %vm1053_vm9, %v1042_v38, %v821_v58  ;;  %v286_v53 = vld [vmem:[%s2911_s10 + $0x108] sm:$0xff]  ;;  %v288_v58 = vld [vmem:[%s2911_s10 + $0x118] sm:$0x3]  ;;  %v959_v38 = vsel %vm948_vm4, %v938_v5, %v3502_v21 }
 0x132   : > { %579 = vrot.lane.b32.xlu1 %v283_v6, %s2833_s14  ;;  %519 = vrot.lane.b32.xlu0 %v480_v45, %s2834_s15  ;;  %v670_v45 = vrot.slane %v284_v48, 2  ;;  %v797_v26 = vrot.slane %v286_v53, 1  ;;  %v800_v8 = vrot.slane %v288_v58, 1  ;;  %v862_v36 = vrot.slane %v286_v53, 2 }
 0x133   : > { %2673 = vmatprep.mubr.msk.f32.mxu0 %vm1107_vm11, %v1083_v42  ;;  %v798_v42 = vrot.slane %v287_v1, 1  ;;  %v865_v39 = vrot.slane %v288_v58, 2 }
 0x134   : > { %v3555_v29 = vpop.permute.xlu1 %631  ;;  %v3557_v10 = vpop.permute.xlu0 %394  ;;  %v671_v2 = vsel %vm430_vm0, %v669_v46, %v670_v45  ;;  %v673_v23 = vsel %vm430_vm0, %v670_v45, %v672_v59 }
 0x135   : > { %v801_v46 = vsel %vm319_vm1, %v798_v42, %v800_v8  ;;  %v799_v45 = vsel %vm319_vm1, %v797_v26, %v798_v42 }
 0x136   : > { %834 = vrot.lane.b32.xlu1 %v606_v25, %s2839_s9  ;;  %770 = vrot.lane.b32.xlu0 %v284_v48, %s2838_s29 }
 0x138   : > { %v886_v51 = vpop.permute.xlu1 %885  ;;  %v695_v13 = vpop.permute.xlu0 %694 }
 0x139   : > { %v1084_v32 = vsel %vm1074_vm10, %v1063_v44, %v886_v51  ;;  %v980_v44 = vsel %vm969_vm5, %v959_v38, %v3514_v4 }
 0x13a   : > { %645 = vrot.lane.b32.xlu1 %v606_v25, %s2836_s17  ;;  %581 = vrot.lane.b32.xlu0 %v284_v48, %s2833_s14  ;;  %v1001_v14 = vsel %vm990_vm6, %v980_v44, %v3531_v40  ;;  %v939_v40 = vsel %vm927_vm3, %v3120_v17, %v3504_v0 }
 0x13b   : > { %2674 = vmatmul.mubr.msk.f32.gmra.mrb[8].mxu0 %vm1107_vm11, %v1084_v32  ;;  %v1022_v57 = vsel %vm1011_vm7, %v1001_v14, %v695_v13  ;;  %v960_v13 = vsel %vm948_vm4, %v939_v40, %v3516_v27 }
 0x13c   : > { %v3573_v31 = vpop.permute.xlu1 %505  ;;  %v3575_v6 = vpop.permute.xlu0 %396 }
 0x13e   : > { %899 = vrot.lane.b32.xlu1 %v671_v2, %s2840_s25  ;;  %836 = vrot.lane.b32.xlu0 %v608_v12, %s2839_s9 }
 0x140   : > { %v757_v30 = vpop.permute.xlu1 %756  ;;  %v697_v48 = vpop.permute.xlu0 %696 }
 0x141   : > { %v1043_v21 = vsel %vm1032_vm8, %v1022_v57, %v757_v30  ;;  %v981_v30 = vsel %vm969_vm5, %v960_v13, %v3533_v47 }
 0x142   : > { %710 = vrot.lane.b32.xlu1 %v671_v2, %s2837_s19  ;;  %647 = vrot.lane.b32.xlu0 %v608_v12, %s2836_s17  ;;  %v866_v2 = vsel %vm430_vm0, %v863_v60, %v865_v39  ;;  %v864_v12 = vsel %vm430_vm0, %v862_v36, %v863_v60  ;;  %v1002_v42 = vsel %vm990_vm6, %v981_v30, %v3555_v29 }
 0x143   : > { %v1023_v26 = vsel %vm1011_vm7, %v1002_v42, %v697_v48  ;;  %v940_v48 = vsel %vm927_vm3, %v3177_v52, %v3557_v10  ;;  %v941_v52 = vsel %vm927_vm3, %v3185_v55, %v3575_v6 }
 0x144   : > { %v568_v24 = vpop.permute.xlu1 %567  ;;  %v3582_v16 = vpop.permute.xlu0 %507 }
 0x145   : > { %v962_v10 = vsel %vm948_vm4, %v941_v52, %v3582_v16 }
 0x146   : > { %712 = vrot.lane.b32.xlu1 %v673_v23, %s2837_s19  ;;  %901 = vrot.lane.b32.xlu0 %v673_v23, %s2840_s25 }
 0x148   : > { %v823_v25 = vpop.permute.xlu1 %822  ;;  %v759_v49 = vpop.permute.xlu0 %758 }
 0x149   : > { %v1064_v59 = vsel %vm1053_vm9, %v1043_v21, %v823_v25  ;;  %v1044_v17 = vsel %vm1032_vm8, %v1023_v26, %v759_v49  ;;  %v961_v49 = vsel %vm948_vm4, %v940_v48, %v3573_v31  ;;  %v3662_v48 = vld [vmem:[%s4279_s2] ss:$0 sm:$0xff] }
 0x14a   : > { %774 = vrot.lane.b32.xlu1 %v287_v1, %s2838_s29  ;;  %772 = vrot.lane.b32.xlu0 %v286_v53, %s2838_s29  ;;  %v982_v39 = vsel %vm969_vm5, %v961_v49, %v568_v24 }
 0x14c   : > { %v634_v51 = vpop.permute.xlu1 %633  ;;  %v570_v32 = vpop.permute.xlu0 %569 }
 0x14d   : > { %v1003_v57 = vsel %vm990_vm6, %v982_v39, %v634_v51  ;;  %v983_v31 = vsel %vm969_vm5, %v962_v10, %v570_v32 }
 0x14e   : > { %840 = vrot.lane.b32.xlu1 %v801_v46, %s2839_s9  ;;  %838 = vrot.lane.b32.xlu0 %v799_v45, %s2839_s9 }
 0x150   : > { %v888_v4 = vpop.permute.xlu1 %887  ;;  %v825_v23 = vpop.permute.xlu0 %824 }
 0x151   : > { %v1085_v1 = vsel %vm1074_vm10, %v1064_v59, %v888_v4  ;;  %v1065_v0 = vsel %vm1053_vm9, %v1044_v17, %v825_v23 }
 0x152   : > { %905 = vrot.lane.b32.xlu1 %v866_v2, %s2840_s25  ;;  %903 = vrot.lane.b32.xlu0 %v864_v12, %s2840_s25 }
 0x153   : > { %2676 = vmatprep.mubr.msk.f32.mxu0 %vm1107_vm11, %v1085_v1 }
 0x154   : > { %v636_v53 = vpop.permute.xlu1 %635  ;;  %v399_v58 = vpop.permute.xlu0 %398 }
 0x155   : > { %v1004_v1 = vsel %vm990_vm6, %v983_v31, %v636_v53 }
 0x158   : > { %v890_v8 = vpop.permute.xlu1 %889  ;;  %v699_v25 = vpop.permute.xlu0 %698 }
 0x159   : > { %v1086_v27 = vsel %vm1074_vm10, %v1065_v0, %v890_v8  ;;  %v1024_v21 = vsel %vm1011_vm7, %v1003_v57, %v699_v25 }
 0x15a   : > { %2677 = vmatmul.mubr.msk.f32.gmra.mrb[10].mxu0 %vm1107_vm11, %v1086_v27  ;;  %v942_v27 = vsel %vm927_vm3, %v3262_v62, %v399_v58 }
 0x15c   : > { %v510_v5 = vpop.permute.xlu1 %509  ;;  %v401_v60 = vpop.permute.xlu0 %400 }
 0x160   : > { %v761_v47 = vpop.permute.xlu1 %760  ;;  %v701_v36 = vpop.permute.xlu0 %700 }
 0x161   : > { %v1045_v2 = vsel %vm1032_vm8, %v1024_v21, %v761_v47  ;;  %v1025_v40 = vsel %vm1011_vm7, %v1004_v1, %v701_v36  ;;  %v963_v47 = vsel %vm948_vm4, %v942_v27, %v510_v5 }
 0x164   : > { %v572_v38 = vpop.permute.xlu1 %571  ;;  %v512_v46 = vpop.permute.xlu0 %511 }
 0x165   : > { %v984_v36 = vsel %vm969_vm5, %v963_v47, %v572_v38 }
 0x168   : > { %v827_v45 = vpop.permute.xlu1 %826  ;;  %v763_v29 = vpop.permute.xlu0 %762 }
 0x169   : > { %v1066_v12 = vsel %vm1053_vm9, %v1045_v2, %v827_v45  ;;  %v1046_v13 = vsel %vm1032_vm8, %v1025_v40, %v763_v29 }
 0x16c   : > { %v638_v44 = vpop.permute.xlu1 %637  ;;  %v574_v14 = vpop.permute.xlu0 %573 }
 0x16d   : > { %v1005_v49 = vsel %vm990_vm6, %v984_v36, %v638_v44  ;;  %v943_v44 = vsel %vm927_vm3, %v3271_v7, %v401_v60 }
 0x16e   : > { %v964_v52 = vsel %vm948_vm4, %v943_v44, %v512_v46 }
 0x16f   : > { %v985_v10 = vsel %vm969_vm5, %v964_v52, %v574_v14 }
 0x170   : > { %v892_v59 = vpop.permute.xlu1 %891  ;;  %v829_v4 = vpop.permute.xlu0 %828 }
 0x171   : > { %v1087_v23 = vsel %vm1074_vm10, %v1066_v12, %v892_v59  ;;  %v1067_v30 = vsel %vm1053_vm9, %v1046_v13, %v829_v4 }
 0x172   : > { %2679 = vmatprep.mubr.msk.f32.mxu0 %vm1107_vm11, %v1087_v23 }
 0x174   : > { %v640_v24 = vpop.permute.xlu1 %639  ;;  %v403_v51 = vpop.permute.xlu0 %402 }
 0x175   : > { %v1006_v40 = vsel %vm990_vm6, %v985_v10, %v640_v24 }
 0x178   : > { %v894_v42 = vpop.permute.xlu1 %893  ;;  %v703_v26 = vpop.permute.xlu0 %702 }
 0x179   : > { %v1088_v55 = vsel %vm1074_vm10, %v1067_v30, %v894_v42  ;;  %v1026_v39 = vsel %vm1011_vm7, %v1005_v49, %v703_v26 }
 0x17a   : > { %2680 = vmatmul.mubr.msk.f32.gmra.mrb[12].mxu0 %vm1107_vm11, %v1088_v55 }
 0x17c   : > { %v514_v6 = vpop.permute.xlu1 %513  ;;  %v3651_v16 = vpop.permute.xlu0 %404 }
 0x180   : > { %v765_v32 = vpop.permute.xlu1 %764  ;;  %v705_v17 = vpop.permute.xlu0 %704 }
 0x181   : > { %v1047_v21 = vsel %vm1032_vm8, %v1026_v39, %v765_v32  ;;  %v1027_v13 = vsel %vm1011_vm7, %v1006_v40, %v705_v17  ;;  %v944_v17 = vsel %vm927_vm3, %v3351_v3, %v403_v51 }
 0x184   : > { %v576_v0 = vpop.permute.xlu1 %575  ;;  %v3653_v8 = vpop.permute.xlu0 %515 }
 0x188   : > { %v831_v53 = vpop.permute.xlu1 %830  ;;  %v767_v25 = vpop.permute.xlu0 %766 }
 0x189   : > { %v1068_v5 = vsel %vm1053_vm9, %v1047_v21, %v831_v53  ;;  %v1048_v30 = vsel %vm1032_vm8, %v1027_v13, %v767_v25  ;;  %v965_v25 = vsel %vm948_vm4, %v944_v17, %v514_v6 }
 0x18a   : > { %v986_v36 = vsel %vm969_vm5, %v965_v25, %v576_v0 }
 0x18c   : > { %v642_v45 = vpop.permute.xlu1 %641  ;;  %v578_v29 = vpop.permute.xlu0 %577 }
 0x18e   : > { %v2663_v57 = vpop.f32.mrb[0].mxu0 }
 0x18f   : > { %v1244_v62 = vadd.f32 %v2663_v57, %v3662_v48  ;;  %v1238_v58 = vpop.f32.mrb[1].mxu0  ;;  %v1007_v57 = vsel %vm990_vm6, %v986_v36, %v642_v45  ;;  %v945_v45 = vsel %vm927_vm3, %v3360_v18, %v3651_v16 }
 0x190   : > { %v1239_v38 = vadd.f32 %v3662_v48, %v1238_v58  ;;  %v896_v2 = vpop.permute.xlu1 %895  ;;  %v833_v12 = vpop.permute.xlu0 %832 }
 0x191   : > { %v1338_v59 = vmax.f32 %v1244_v62, 0.0  ;;  %v1089_v4 = vsel %vm1074_vm10, %v1068_v5, %v896_v2  ;;  %v1069_v7 = vsel %vm1053_vm9, %v1048_v30, %v833_v12 }
 0x192   : > { %v1337_v23 = vmax.f32 %v1239_v38, 0.0  ;;  %2682 = vmatprep.mubr.msk.f32.mxu0 %vm1107_vm11, %v1089_v4  ;;  %v966_v4 = vsel %vm948_vm4, %v945_v45, %v3653_v8 }
 0x193   : > { %1379 = vst.msk [vmem:[#allocation2 + $0x9] sm:$0xff] %vm927_vm3, %v1338_v59  ;;  %v987_v44 = vsel %vm969_vm5, %v966_v4, %v578_v29 }
 0x194   : > { %1378 = vst.msk [vmem:[#allocation2 + $0x1] sm:$0xff] %vm927_vm3, %v1337_v23  ;;  %v644_v31 = vpop.permute.xlu1 %643  ;;  %v407_v1 = vpop.permute.xlu0 %406 }
 0x195   : > { %v1008_v10 = vsel %vm990_vm6, %v987_v44, %v644_v31 }
 0x198   : > { %v898_v60 = vpop.permute.xlu1 %897  ;;  %v707_v42 = vpop.permute.xlu0 %706 }
 0x199   : > { %v1090_v46 = vsel %vm1074_vm10, %v1069_v7, %v898_v60  ;;  %v1028_v21 = vsel %vm1011_vm7, %v1007_v57, %v707_v42  ;;  %v946_v60 = vsel %vm927_vm3, %v3440_v37, %v407_v1 }
 0x19a   : > { %2683 = vmatmul.mubr.msk.f32.gmra.mrb[14].mxu0 %vm1107_vm11, %v1090_v46 }
 0x19c   : > { %v518_v26 = vpop.permute.xlu1 %517  ;;  %v409_v14 = vpop.permute.xlu0 %408 }
 0x19d   : > { %v947_v31 = vsel %vm927_vm3, %v3449_v28, %v409_v14  ;;  %v967_v42 = vsel %vm948_vm4, %v946_v60, %v518_v26 }
 0x1a0   : > { %v769_v55 = vpop.permute.xlu1 %768  ;;  %v709_v32 = vpop.permute.xlu0 %708 }
 0x1a1   : > { %v1049_v58 = vsel %vm1032_vm8, %v1028_v21, %v769_v55  ;;  %v1029_v40 = vsel %vm1011_vm7, %v1008_v10, %v709_v32  ;;  %v2841_v10 = vmov 0.0  }
 0x1a2   : > { %1358 = vst.msk [vmem:[#allocation2] sm:$0x1] %vm1357_vm12, %v2841_v10  ;;  %1359 = vst.msk [vmem:[#allocation2 + $0x18] sm:$0x1] %vm1357_vm12, %v2841_v10 }
 0x1a3   : > { %1360 = vst.msk [vmem:[#allocation2 + $0x30] sm:$0x1] %vm1357_vm12, %v2841_v10  ;;  %1361 = vst.msk [vmem:[#allocation2 + $0x48] sm:$0x1] %vm1357_vm12, %v2841_v10 }
 0x1a4   : > { %v580_v53 = vpop.permute.xlu1 %579  ;;  %v520_v27 = vpop.permute.xlu0 %519  ;;  %1362 = vst.msk [vmem:[#allocation2 + $0x60] sm:$0x1] %vm1357_vm12, %v2841_v10  ;;  %1363 = vst.msk [vmem:[#allocation2 + $0x78] sm:$0x1] %vm1357_vm12, %v2841_v10 }
 0x1a5   : > { %v968_v46 = vsel %vm948_vm4, %v947_v31, %v520_v27  ;;  %v988_v55 = vsel %vm969_vm5, %v967_v42, %v580_v53  ;;  %1364 = vst.msk [vmem:[#allocation2 + $0x90] sm:$0x1] %vm1357_vm12, %v2841_v10  ;;  %1365 = vst.msk [vmem:[#allocation2 + $0xa8] sm:$0x1] %vm1357_vm12, %v2841_v10 }
 0x1a6   : > { %1366 = vst.msk [vmem:[#allocation2 + $0xc0] sm:$0x1] %vm1357_vm12, %v2841_v10  ;;  %1367 = vst.msk [vmem:[#allocation2 + $0xd8] sm:$0x1] %vm1357_vm12, %v2841_v10 }
 0x1a7   : > { %1368 = vst.msk [vmem:[#allocation2 + $0x11] sm:$0x1] %vm1357_vm12, %v2841_v10  ;;  %1369 = vst.msk [vmem:[#allocation2 + $0x29] sm:$0x1] %vm1357_vm12, %v2841_v10 }
 0x1a8   : > { %v835_v47 = vpop.permute.xlu1 %834  ;;  %v771_v24 = vpop.permute.xlu0 %770  ;;  %1370 = vst.msk [vmem:[#allocation2 + $0x41] sm:$0x1] %vm1357_vm12, %v2841_v10  ;;  %1371 = vst.msk [vmem:[#allocation2 + $0x59] sm:$0x1] %vm1357_vm12, %v2841_v10 }
 0x1a9   : > { %v1070_v2 = vsel %vm1053_vm9, %v1049_v58, %v835_v47  ;;  %v1050_v18 = vsel %vm1032_vm8, %v1029_v40, %v771_v24  ;;  %1372 = vst.msk [vmem:[#allocation2 + $0x71] sm:$0x1] %vm1357_vm12, %v2841_v10  ;;  %1373 = vst.msk [vmem:[#allocation2 + $0x89] sm:$0x1] %vm1357_vm12, %v2841_v10 }
 0x1aa   : > { %1374 = vst.msk [vmem:[#allocation2 + $0xa1] sm:$0x1] %vm1357_vm12, %v2841_v10  ;;  %1375 = vst.msk [vmem:[#allocation2 + $0xb9] sm:$0x1] %vm1357_vm12, %v2841_v10 }
 0x1ab   : > { %1376 = vst.msk [vmem:[#allocation2 + $0xd1] sm:$0x1] %vm1357_vm12, %v2841_v10  ;;  %1377 = vst.msk [vmem:[#allocation2 + $0xe9] sm:$0x1] %vm1357_vm12, %v2841_v10 }
 0x1ac   : > { %v646_v49 = vpop.permute.xlu1 %645  ;;  %v582_v39 = vpop.permute.xlu0 %581 }
 0x1ad   : > { %v989_v32 = vsel %vm969_vm5, %v968_v46, %v582_v39  ;;  %v1009_v17 = vsel %vm990_vm6, %v988_v55, %v646_v49 }
 0x1ae   : > { %v2666_v62 = vpop.f32.mrb[2].mxu0 }
 0x1af   : > { %v1254_v5 = vadd.f32 %v2666_v62, %v3662_v48  ;;  %v1248_v38 = vpop.f32.mrb[3].mxu0 }
 0x1b0   : > { %v1249_v3 = vadd.f32 %v3662_v48, %v1248_v38  ;;  %v900_v51 = vpop.permute.xlu1 %899  ;;  %v837_v6 = vpop.permute.xlu0 %836 }
 0x1b1   : > { %v1340_v12 = vmax.f32 %v1254_v5, 0.0  ;;  %v1091_v0 = vsel %vm1074_vm10, %v1070_v2, %v900_v51  ;;  %v1071_v16 = vsel %vm1053_vm9, %v1050_v18, %v837_v6 }
 0x1b2   : > { %v1339_v59 = vmax.f32 %v1249_v3, 0.0  ;;  %2685 = vmatprep.mubr.msk.f32.mxu0 %vm1107_vm11, %v1091_v0 }
 0x1b3   : > { %1381 = vst.msk [vmem:[#allocation2 + $0x21] sm:$0xff] %vm927_vm3, %v1340_v12 }
 0x1b4   : > { %1380 = vst.msk [vmem:[#allocation2 + $0x19] sm:$0xff] %vm927_vm3, %v1339_v59  ;;  %v711_v23 = vpop.permute.xlu1 %710  ;;  %v648_v52 = vpop.permute.xlu0 %647 }
 0x1b5   : > { %v1010_v25 = vsel %vm990_vm6, %v989_v32, %v648_v52  ;;  %v1030_v36 = vsel %vm1011_vm7, %v1009_v17, %v711_v23 }
 0x1b8   : > { %v713_v13 = vpop.permute.xlu1 %712  ;;  %v902_v30 = vpop.permute.xlu0 %901 }
 0x1b9   : > { %v1092_v8 = vsel %vm1074_vm10, %v1071_v16, %v902_v30  ;;  %v1031_v37 = vsel %vm1011_vm7, %v1010_v25, %v713_v13 }
 0x1ba   : > { %2686 = vmatmul.mubr.msk.f32.gmra.mrb[16].mxu0 %vm1107_vm11, %v1092_v8 }
 0x1bc   : > { %v775_v7 = vpop.permute.xlu1 %774  ;;  %v773_v29 = vpop.permute.xlu0 %772 }
 0x1bd   : > { %v1052_v28 = vsel %vm1032_vm8, %v1031_v37, %v775_v7  ;;  %v1051_v1 = vsel %vm1032_vm8, %v1030_v36, %v773_v29 }
 0x1c0   : > { %v841_v47 = vpop.permute.xlu1 %840  ;;  %v839_v24 = vpop.permute.xlu0 %838 }
 0x1c1   : > { %v1073_v26 = vsel %vm1053_vm9, %v1052_v28, %v841_v47  ;;  %v1072_v14 = vsel %vm1053_vm9, %v1051_v1, %v839_v24 }
 0x1c4   : > { %v906_v53 = vpop.permute.xlu1 %905  ;;  %v904_v27 = vpop.permute.xlu0 %903 }
 0x1c5   : > { %v1094_v39 = vsel %vm1074_vm10, %v1073_v26, %v906_v53  ;;  %v1093_v49 = vsel %vm1074_vm10, %v1072_v14, %v904_v27 }
 0x1c6   : > { %2688 = vmatprep.mubr.msk.f32.mxu0 %vm1107_vm11, %v1093_v49 }
 0x1c7   : > { %2689 = vmatmul.mubr.msk.f32.gmra.mrb[18].mxu0 %vm1107_vm11, %v1094_v39 }
 0x1ce   : > { %v2669_v57 = vpop.f32.mrb[4].mxu0 }
 0x1cf   : > { %v1264_v21 = vadd.f32 %v2669_v57, %v3662_v48  ;;  %v1258_v62 = vpop.f32.mrb[5].mxu0 }
 0x1d0   : > { %v1259_v58 = vadd.f32 %v3662_v48, %v1258_v62  ;;  %v2842_v62 = vmov (!%p2583_p7), 0.0  }
 0x1d1   : > { %v1342_v5 = vmax.f32 %v1264_v21, 0.0  ;;  %1402 = vst.msk [vmem:[#allocation2] sm:$0xff] (!%p2583_p7), %vm927_vm3, %v2842_v62  ;;  %1403 = vst.msk [vmem:[#allocation2 + $0x8] sm:$0xff] (!%p2583_p7), %vm927_vm3, %v2842_v62 }
 0x1d2   : > { %v1341_v38 = vmax.f32 %v1259_v58, 0.0  ;;  %1405 = vst.msk [vmem:[#allocation2 + $0x10] sm:$0x3] (!%p2583_p7), %vm1404_vm13, %v2842_v62 }
 0x1d3   : > { %1383 = vst.msk [vmem:[#allocation2 + $0x39] sm:$0xff] %vm927_vm3, %v1342_v5 }
 0x1d4   : > { %1382 = vst.msk [vmem:[#allocation2 + $0x31] sm:$0xff] %vm927_vm3, %v1341_v38 }
 0x1ee   : > { %v2672_v2 = vpop.f32.mrb[6].mxu0 }
 0x1ef   : > { %v1274_v3 = vadd.f32 %v2672_v2, %v3662_v48  ;;  %v1268_v51 = vpop.f32.mrb[7].mxu0 }
 0x1f0   : > { %v1269_v6 = vadd.f32 %v3662_v48, %v1268_v51 }
 0x1f1   : > { %v1344_v12 = vmax.f32 %v1274_v3, 0.0 }
 0x1f2   : > { %v1343_v0 = vmax.f32 %v1269_v6, 0.0 }
 0x1f3   : > { %1385 = vst.msk [vmem:[#allocation2 + $0x51] sm:$0xff] %vm927_vm3, %v1344_v12 }
 0x1f4   : > { %1384 = vst.msk [vmem:[#allocation2 + $0x49] sm:$0xff] %vm927_vm3, %v1343_v0 }
 0x20e   : > { %v2675_v45 = vpop.f32.mrb[8].mxu0 }
 0x20f   : > { %v1284_v59 = vadd.f32 %v2675_v45, %v3662_v48  ;;  %v1278_v4 = vpop.f32.mrb[9].mxu0 }
 0x210   : > { %v1279_v44 = vadd.f32 %v3662_v48, %v1278_v4 }
 0x211   : > { %v1346_v23 = vmax.f32 %v1284_v59, 0.0 }
 0x212   : > { %v1345_v52 = vmax.f32 %v1279_v44, 0.0 }
 0x213   : > { %1387 = vst.msk [vmem:[#allocation2 + $0x69] sm:$0xff] %vm927_vm3, %v1346_v23 }
 0x214   : > { %1386 = vst.msk [vmem:[#allocation2 + $0x61] sm:$0xff] %vm927_vm3, %v1345_v52 }
 0x22d   : > { %v2678_v40 = vpop.f32.mrb[10].mxu0 }
 0x22e   : > { %v1294_v18 = vadd.f32 %v2678_v40, %v3662_v48  ;;  %v1288_v16 = vpop.f32.mrb[11].mxu0 }
 0x22f   : > { %v1289_v13 = vadd.f32 %v3662_v48, %v1288_v16 }
 0x230   : > { %v1348_v30 = vmax.f32 %v1294_v18, 0.0 }
 0x231   : > { %v1347_v8 = vmax.f32 %v1289_v13, 0.0 }
 0x232   : > { %1389 = vst.msk [vmem:[#allocation2 + $0x81] sm:$0xff] %vm927_vm3, %v1348_v30 }
 0x233   : > { %1388 = vst.msk [vmem:[#allocation2 + $0x79] sm:$0xff] %vm927_vm3, %v1347_v8 }
 0x24d   : > { %v2681_v7 = vpop.f32.mrb[12].mxu0 }
 0x24e   : > { %v1304_v29 = vadd.f32 %v2681_v7, %v3662_v48  ;;  %v1298_v60 = vpop.f32.mrb[13].mxu0 }
 0x24f   : > { %v1299_v31 = vadd.f32 %v3662_v48, %v1298_v60 }
 0x250   : > { %v1350_v42 = vmax.f32 %v1304_v29, 0.0 }
 0x251   : > { %v1349_v46 = vmax.f32 %v1299_v31, 0.0 }
 0x252   : > { %1391 = vst.msk [vmem:[#allocation2 + $0x99] sm:$0xff] %vm927_vm3, %v1350_v42 }
 0x253   : > { %1390 = vst.msk [vmem:[#allocation2 + $0x91] sm:$0xff] %vm927_vm3, %v1349_v46 }
 0x26d   : > { %v2684_v55 = vpop.f32.mrb[14].mxu0 }
 0x26e   : > { %v1314_v32 = vadd.f32 %v2684_v55, %v3662_v48  ;;  %v1308_v47 = vpop.f32.mrb[15].mxu0 }
 0x26f   : > { %v1309_v24 = vadd.f32 %v3662_v48, %v1308_v47 }
 0x270   : > { %v1352_v17 = vmax.f32 %v1314_v32, 0.0 }
 0x271   : > { %v1351_v25 = vmax.f32 %v1309_v24, 0.0 }
 0x272   : > { %1393 = vst.msk [vmem:[#allocation2 + $0xb1] sm:$0xff] %vm927_vm3, %v1352_v17 }
 0x273   : > { %1392 = vst.msk [vmem:[#allocation2 + $0xa9] sm:$0xff] %vm927_vm3, %v1351_v25 }
 0x28d   : > { %v2687_v36 = vpop.f32.mrb[16].mxu0 }
 0x28e   : > { %v1324_v37 = vadd.f32 %v2687_v36, %v3662_v48  ;;  %v1318_v28 = vpop.f32.mrb[17].mxu0 }
 0x28f   : > { %v1319_v1 = vadd.f32 %v3662_v48, %v1318_v28 }
 0x290   : > { %v1354_v26 = vmax.f32 %v1324_v37, 0.0 }
 0x291   : > { %v1353_v14 = vmax.f32 %v1319_v1, 0.0 }
 0x292   : > { %1395 = vst.msk [vmem:[#allocation2 + $0xc9] sm:$0xff] %vm927_vm3, %v1354_v26 }
 0x293   : > { %1394 = vst.msk [vmem:[#allocation2 + $0xc1] sm:$0xff] %vm927_vm3, %v1353_v14 }
 0x29a   : > { %v2690_v53 = vpop.f32.mrb[18].mxu0  ;;  %1401 = sbr.rel (%p2583_p7) target bundleno = 673 (0x2a1), region = 44 }
 0x29b   : > { %v1334_v27 = vadd.f32 %v2690_v53, %v3662_v48  ;;  %v1328_v39 = vpop.f32.mrb[19].mxu0 }
 0x29c   : > { %v1329_v49 = vadd.f32 %v3662_v48, %v1328_v39 }
 0x29d   : > { %v1356_v57 = vmax.f32 %v1334_v27, 0.0 }
 0x29e   : > { %v1355_v21 = vmax.f32 %v1329_v49, 0.0 }
 0x29f   : > { %1397 = vst.msk [vmem:[#allocation2 + $0xe1] sm:$0xff] %vm927_vm3, %v1356_v57 }
 0x2a0   : > { %1396 = vst.msk [vmem:[#allocation2 + $0xd9] sm:$0xff] %vm927_vm3, %v1355_v21 }
 0x2a1 PF: > { %p2584_p8 = scmp.ne.s32.totalorder %s2815_s18, 1 }
 0x2a2   : > { %vm1413_vm14 = vcmask (!%p2584_p8), 25600   ;;  %v2843_v48 = vmov (!%p2584_p8), 0.0  }
 0x2a3   : > { %1409 = sbr.rel (%p2584_p8) target bundleno = 682 (0x2aa), region = 48  ;;  %1411 = vst.msk [vmem:[#allocation2 + $0xd8] sm:$0xff] (!%p2584_p8), %vm927_vm3, %v2843_v48  ;;  %1412 = vst.msk [vmem:[#allocation2 + $0xe0] sm:$0xff] (!%p2584_p8), %vm927_vm3, %v2843_v48 }
 0x2a4   : > { %1414 = vst.msk [vmem:[#allocation2 + $0xe8] sm:$0x3] (!%p2584_p8), %vm1413_vm14, %v2843_v48 }
 0x2aa PF: > { %v1447_v58 = vld [vmem:[#allocation2 + $0x2] sm:$0xff]  ;;  %v1448_v38 = vld [vmem:[#allocation2 + $0xa] sm:$0xff]  ;;  %v3794_v51 = vld [vmem:[#allocation2 + $0x18] sm:$0xff] }
 0x2ab   : > { %v1431_v5 = vld [vmem:[#allocation2 + $0x1] sm:$0xff]  ;;  %1641 = vrot.lane.b32.xlu1 %v1447_v58, %s2834_s15  ;;  %v1432_v2 = vld [vmem:[#allocation2 + $0x9] sm:$0xff]  ;;  %v1433_v6 = vld [vmem:[#allocation2 + $0x19] sm:$0xff] }
 0x2ac   : > { %1577 = vrot.lane.b32.xlu0 %v1431_v5, %s2835_s16  ;;  %v3792_v3 = vld [vmem:[#allocation2 + $0x20] sm:$0xff]  ;;  %v3806_v45 = vld [vmem:[#allocation2 + $0x30] sm:$0xff]  ;;  %v2202_v44 = vld [vmem:[%s4280_s3 + $0x8] sm:$0xff] }
 0x2ad   : > { %v1496_v12 = vld [vmem:[#allocation2 + $0x1a] sm:$0xff]  ;;  %v1497_v59 = vld [vmem:[#allocation2 + $0x22] sm:$0xff]  ;;  %v2203_v52 = vld [vmem:[%s4280_s3 + $0x10] sm:$0xff] }
 0x2ae   : > { %v1481_v0 = vld [vmem:[#allocation2 + $0x21] sm:$0xff]  ;;  %v2204_v10 = vld [vmem:[%s4280_s3 + $0x18] sm:$0xff]  ;;  %v1531_v60 = vld [vmem:[#allocation2 + $0x49] sm:$0xff] }
 0x2af   : > { %1643 = vrot.lane.b32.xlu1 %v1448_v38, %s2834_s15  ;;  %v2201_v4 = vld [vmem:[%s4280_s3] sm:$0xff]  ;;  %v1529_v40 = vld [vmem:[#allocation2 + $0x31] sm:$0xff]  ;;  %v2737_v16 = vpack.c.bf16 %v2204_v10, %v2203_v52  ;;  %v3847_v29 = vld [vmem:[#allocation2 + $0x48] sm:$0xff] }
 0x2b0   : > { %1579 = vrot.lane.b32.xlu0 %v1432_v2, %s2835_s16  ;;  %v2733_v23 = vpack.c.bf16 %v2202_v44, %v2201_v4  ;;  %v3826_v18 = vld [vmem:[#allocation2 + $0x38] sm:$0xff]  ;;  %v2205_v13 = vld [vmem:[%s4280_s3 + $0x20] sm:$0xf]  ;;  %v3855_v31 = vld [vmem:[#allocation2 + $0x50] sm:$0xff] }
 0x2b1   : > { %v1545_v30 = vld [vmem:[#allocation2 + $0x32] sm:$0xff]  ;;  %v1546_v7 = vld [vmem:[#allocation2 + $0x3a] sm:$0xff]  ;;  %v1547_v42 = vld [vmem:[#allocation2 + $0x4a] sm:$0xff] }
 0x2b2   : > { %2734 = vmatprep.subr.bf16.mxu1 %v2733_v23  ;;  %v1530_v8 = vld [vmem:[#allocation2 + $0x39] sm:$0xff]  ;;  %v1532_v46 = vld [vmem:[#allocation2 + $0x51] sm:$0xff]  ;;  %v1533_v47 = vld [vmem:[#allocation2 + $0x61] sm:$0xff] }
 0x2b3   : > { %1707 = vrot.lane.b32.xlu1 %v3792_v3, %s2833_s14  ;;  %2736 = vmatpush3.bf16.msra.mxu1 %v2733_v23  ;;  %v1548_v55 = vld [vmem:[#allocation2 + $0x52] sm:$0xff]  ;;  %v3871_v32 = vld [vmem:[#allocation2 + $0x60] sm:$0xff]  ;;  %v3879_v24 = vld [vmem:[#allocation2 + $0x68] sm:$0xff] }
 0x2b4   : > { %1705 = vrot.lane.b32.xlu0 %v3794_v51, %s2833_s14  ;;  %2738 = vmatprep.subr.bf16.mxu1 %v2737_v16  ;;  %v1549_v17 = vld [vmem:[#allocation2 + $0x62] sm:$0xff]  ;;  %v1550_v36 = vld [vmem:[#allocation2 + $0x6a] sm:$0xff]  ;;  %v3895_v1 = vld [vmem:[#allocation2 + $0x78] sm:$0xff] }
 0x2b5   : > { %v1534_v25 = vld [vmem:[#allocation2 + $0x69] sm:$0xff]  ;;  %v1535_v39 = vld [vmem:[#allocation2 + $0x79] sm:$0xff]  ;;  %v1536_v5 = vld [vmem:[#allocation2 + $0x81] sm:$0xff] }
 0x2b6   : > { %v3903_v49 = vld [vmem:[#allocation2 + $0x80] sm:$0xff] }
 0x2b7   : > { %1581 = vrot.lane.b32.xlu1 %v1433_v6, %s2835_s16  ;;  %2740 = vmatpush3.bf16.msra.mxu1 %v2737_v16  ;;  %v1551_v58 = vld [vmem:[#allocation2 + $0x7a] sm:$0xff]  ;;  %v3931_v16 = vld [vmem:[#allocation2 + $0x90] sm:$0xff] }
 0x2b8   : > { %1769 = vrot.lane.b32.xlu0 %v1433_v6, %s2836_s17  ;;  %2699 = vmatprep.subr.msk.mxu1 %vm1168_vm2, %v2205_v13  ;;  %v1415_v44 = vld [vmem:[#allocation2] sm:$0xff] }
 0x2bb   : > { %1833 = vrot.lane.b32.xlu1 %v1496_v12, %s2837_s19  ;;  %2700 = vmatpush3.msk.msra.mxu1 %vm1168_vm2, %v2205_v13 }
 0x2bc   : > { %1771 = vrot.lane.b32.xlu0 %v1481_v0, %s2836_s17 }
 0x2bf   : > { %1645 = vrot.lane.b32.xlu1 %v1496_v12, %s2834_s15 }
 0x2c0   : > { %1583 = vrot.lane.b32.xlu0 %v1481_v0, %s2835_s16  ;;  %v1552_v0 = vld [vmem:[#allocation2 + $0x82] sm:$0xff] }
 0x2c3   : > { %1897 = vrot.lane.b32.xlu1 %v3806_v45, %s2838_s29 }
 0x2c4   : > { %1835 = vrot.lane.b32.xlu0 %v1497_v59, %s2837_s19 }
 0x2c7   : > { %1709 = vrot.lane.b32.xlu1 %v3806_v45, %s2833_s14 }
 0x2c8   : > { %1647 = vrot.lane.b32.xlu0 %v1497_v59, %s2834_s15 }
 0x2cb   : > { %1961 = vrot.lane.b32.xlu1 %v1529_v40, %s2839_s9 }
 0x2cc   : > { %1899 = vrot.lane.b32.xlu0 %v3826_v18, %s2838_s29 }
 0x2cf   : > { %1773 = vrot.lane.b32.xlu1 %v1529_v40, %s2836_s17 }
 0x2d0   : > { %1711 = vrot.lane.b32.xlu0 %v3826_v18, %s2833_s14 }
 0x2d3   : > { %2025 = vrot.lane.b32.xlu1 %v1545_v30, %s2840_s25 }
 0x2d4   : > { %1963 = vrot.lane.b32.xlu0 %v1530_v8, %s2839_s9 }
 0x2d7   : > { %1775 = vrot.lane.b32.xlu1 %v1530_v8, %s2836_s17 }
 0x2d8   : > { %1585 = vrot.lane.b32.xlu0 %v1529_v40, %s2835_s16 }
 0x2db   : > { %2027 = vrot.lane.b32.xlu1 %v1546_v7, %s2840_s25 }
 0x2dc   : > { %1837 = vrot.lane.b32.xlu0 %v1545_v30, %s2837_s19 }
 0x2df   : > { %1649 = vrot.lane.b32.xlu1 %v1545_v30, %s2834_s15 }
 0x2e0   : > { %1587 = vrot.lane.b32.xlu0 %v1530_v8, %s2835_s16 }
 0x2e3   : > { %1901 = vrot.lane.b32.xlu1 %v3847_v29, %s2838_s29 }
 0x2e4   : > { %1839 = vrot.lane.b32.xlu0 %v1546_v7, %s2837_s19 }
 0x2e7   : > { %1713 = vrot.lane.b32.xlu1 %v3847_v29, %s2833_s14 }
 0x2e8   : > { %1651 = vrot.lane.b32.xlu0 %v1546_v7, %s2834_s15  ;;  %v1416_v7 = vld [vmem:[#allocation2 + $0x8] sm:$0xff] }
 0x2eb   : > { %1965 = vrot.lane.b32.xlu1 %v1531_v60, %s2839_s9 }
 0x2ec   : > { %1903 = vrot.lane.b32.xlu0 %v3855_v31, %s2838_s29 }
 0x2ef   : > { %1777 = vrot.lane.b32.xlu1 %v1531_v60, %s2836_s17 }
 0x2f0   : > { %1715 = vrot.lane.b32.xlu0 %v3855_v31, %s2833_s14 }
 0x2f3   : > { %2029 = vrot.lane.b32.xlu1 %v1547_v42, %s2840_s25 }
 0x2f4   : > { %1967 = vrot.lane.b32.xlu0 %v1532_v46, %s2839_s9 }
 0x2f7   : > { %1779 = vrot.lane.b32.xlu1 %v1532_v46, %s2836_s17 }
 0x2f8   : > { %1589 = vrot.lane.b32.xlu0 %v1531_v60, %s2835_s16 }
 0x2fb   : > { %2031 = vrot.lane.b32.xlu1 %v1548_v55, %s2840_s25 }
 0x2fc   : > { %1841 = vrot.lane.b32.xlu0 %v1547_v42, %s2837_s19 }
 0x2ff   : > { %1653 = vrot.lane.b32.xlu1 %v1547_v42, %s2834_s15 }
 0x300   : > { %1591 = vrot.lane.b32.xlu0 %v1532_v46, %s2835_s16 }
 0x303   : > { %1905 = vrot.lane.b32.xlu1 %v3871_v32, %s2838_s29 }
 0x304   : > { %1843 = vrot.lane.b32.xlu0 %v1548_v55, %s2837_s19 }
 0x307   : > { %1717 = vrot.lane.b32.xlu1 %v3871_v32, %s2833_s14 }
 0x308   : > { %1655 = vrot.lane.b32.xlu0 %v1548_v55, %s2834_s15 }
 0x30b   : > { %1969 = vrot.lane.b32.xlu1 %v1533_v47, %s2839_s9 }
 0x30c   : > { %1907 = vrot.lane.b32.xlu0 %v3879_v24, %s2838_s29 }
 0x30f   : > { %1781 = vrot.lane.b32.xlu1 %v1533_v47, %s2836_s17 }
 0x310   : > { %1719 = vrot.lane.b32.xlu0 %v3879_v24, %s2833_s14 }
 0x313   : > { %2033 = vrot.lane.b32.xlu1 %v1549_v17, %s2840_s25 }
 0x314   : > { %1971 = vrot.lane.b32.xlu0 %v1534_v25, %s2839_s9 }
 0x317   : > { %1783 = vrot.lane.b32.xlu1 %v1534_v25, %s2836_s17 }
 0x318   : > { %1593 = vrot.lane.b32.xlu0 %v1533_v47, %s2835_s16 }
 0x31b   : > { %2035 = vrot.lane.b32.xlu1 %v1550_v36, %s2840_s25 }
 0x31c   : > { %1845 = vrot.lane.b32.xlu0 %v1549_v17, %s2837_s19 }
 0x31d   : > { %v1642_v37 = vpop.permute.xlu1 %1641 }
 0x31e   : > { %v1578_v28 = vpop.permute.xlu0 %1577 }
 0x31f   : > { %1657 = vrot.lane.b32.xlu1 %v1549_v17, %s2834_s15  ;;  %v2073_v23 = vsel %vm927_vm3, %v1415_v44, %v1578_v28  ;;  %v1537_v28 = vld [vmem:[#allocation2 + $0x91] sm:$0xff] }
 0x320   : > { %1595 = vrot.lane.b32.xlu0 %v1534_v25, %s2835_s16  ;;  %v2089_v40 = vsel %vm948_vm4, %v2073_v23, %v1642_v37 }
 0x321   : > { %v1644_v26 = vpop.permute.xlu1 %1643 }
 0x322   : > { %v1580_v14 = vpop.permute.xlu0 %1579 }
 0x323   : > { %1909 = vrot.lane.b32.xlu1 %v3895_v1, %s2838_s29  ;;  %v2074_v55 = vsel %vm927_vm3, %v1416_v7, %v1580_v14 }
 0x324   : > { %1847 = vrot.lane.b32.xlu0 %v1550_v36, %s2837_s19  ;;  %v2090_v37 = vsel %vm948_vm4, %v2074_v55, %v1644_v26 }
 0x325   : > { %v1708_v53 = vpop.permute.xlu1 %1707 }
 0x326   : > { %v1706_v27 = vpop.permute.xlu0 %1705  ;;  %v2106_v14 = vsel %vm969_vm5, %v2090_v37, %v1708_v53 }
 0x327   : > { %1721 = vrot.lane.b32.xlu1 %v3895_v1, %s2833_s14  ;;  %v2105_v13 = vsel %vm969_vm5, %v2089_v40, %v1706_v27  ;;  %v3950_v27 = vld [vmem:[#allocation2 + $0x98] sm:$0xff] }
 0x328   : > { %1659 = vrot.lane.b32.xlu0 %v1550_v36, %s2834_s15  ;;  %v1554_v40 = vld [vmem:[#allocation2 + $0x9a] sm:$0xff] }
 0x329   : > { %v3905_v57 = vpop.permute.xlu1 %1581 }
 0x32a   : > { %v1770_v21 = vpop.permute.xlu0 %1769 }
 0x32b   : > { %1973 = vrot.lane.b32.xlu1 %v1535_v39, %s2839_s9  ;;  %v2121_v60 = vsel %vm990_vm6, %v2105_v13, %v1770_v21 }
 0x32c   : > { %1911 = vrot.lane.b32.xlu0 %v3903_v49, %s2838_s29 }
 0x32d   : > { %v1834_v62 = vpop.permute.xlu1 %1833 }
 0x32e   : > { %v1772_v48 = vpop.permute.xlu0 %1771  ;;  %v2137_v42 = vsel %vm1011_vm7, %v2121_v60, %v1834_v62 }
 0x32f   : > { %1785 = vrot.lane.b32.xlu1 %v1535_v39, %s2836_s17  ;;  %v2122_v62 = vsel %vm990_vm6, %v2106_v14, %v1772_v48  ;;  %v1553_v48 = vld [vmem:[#allocation2 + $0x92] sm:$0xff] }
 0x330   : > { %1723 = vrot.lane.b32.xlu0 %v3903_v49, %s2833_s14 }
 0x331   : > { %v3913_v38 = vpop.permute.xlu1 %1645 }
 0x332   : > { %v3915_v2 = vpop.permute.xlu0 %1583 }
 0x333   : > { %2037 = vrot.lane.b32.xlu1 %v1551_v58, %s2840_s25 }
 0x334   : > { %1975 = vrot.lane.b32.xlu0 %v1536_v5, %s2839_s9 }
 0x335   : > { %v1898_v6 = vpop.permute.xlu1 %1897 }
 0x336   : > { %v1836_v12 = vpop.permute.xlu0 %1835  ;;  %v2153_v46 = vsel %vm1032_vm8, %v2137_v42, %v1898_v6 }
 0x337   : > { %1787 = vrot.lane.b32.xlu1 %v1536_v5, %s2836_s17 }
 0x338   : > { %1597 = vrot.lane.b32.xlu0 %v1535_v39, %s2835_s16 }
 0x339   : > { %v3921_v59 = vpop.permute.xlu1 %1709 }
 0x33a   : > { %v3923_v4 = vpop.permute.xlu0 %1647 }
 0x33b   : > { %2039 = vrot.lane.b32.xlu1 %v1552_v0, %s2840_s25 }
 0x33c   : > { %1849 = vrot.lane.b32.xlu0 %v1551_v58, %s2837_s19 }
 0x33d   : > { %v1962_v52 = vpop.permute.xlu1 %1961 }
 0x33e   : > { %v1900_v10 = vpop.permute.xlu0 %1899  ;;  %v2169_v25 = vsel %vm1053_vm9, %v2153_v46, %v1962_v52  ;;  %v2075_v46 = vsel %vm927_vm3, %v3794_v51, %v3905_v57 }
 0x33f   : > { %1661 = vrot.lane.b32.xlu1 %v1551_v58, %s2834_s15  ;;  %v2138_v58 = vsel %vm1011_vm7, %v2122_v62, %v1836_v12  ;;  %v1538_v12 = vld [vmem:[#allocation2 + $0x99] sm:$0xff]  ;;  %v2091_v55 = vsel %vm948_vm4, %v2075_v46, %v3913_v38  ;;  %v2076_v62 = vsel %vm927_vm3, %v3792_v3, %v3915_v2 }
 0x340   : > { %1599 = vrot.lane.b32.xlu0 %v1536_v5, %s2835_s16  ;;  %v2154_v26 = vsel %vm1032_vm8, %v2138_v58, %v1900_v10  ;;  %v1539_v58 = vld [vmem:[#allocation2 + $0xa9] sm:$0xff]  ;;  %v1556_v46 = vld [vmem:[#allocation2 + $0xb2] sm:$0xff] }
 0x341   : > { %v1774_v30 = vpop.permute.xlu1 %1773 }
 0x342   : > { %v3934_v8 = vpop.permute.xlu0 %1711 }
 0x343   : > { %1913 = vrot.lane.b32.xlu1 %v3931_v16, %s2838_s29 }
 0x344   : > { %1851 = vrot.lane.b32.xlu0 %v1552_v0, %s2837_s19 }
 0x345   : > { %v2026_v47 = vpop.permute.xlu1 %2025 }
 0x346   : > { %v1964_v17 = vpop.permute.xlu0 %1963  ;;  %v2185_v36 = vsel %vm1074_vm10, %v2169_v25, %v2026_v47  ;;  %v3988_v47 = vld [vmem:[#allocation2 + $0xa8] sm:$0xff] }
 0x347   : > { %1725 = vrot.lane.b32.xlu1 %v3931_v16, %s2833_s14  ;;  %2701 = vmatprep.mubr.msk.f32.mxu1 %vm1107_vm11, %v2185_v36  ;;  %v2170_v5 = vsel %vm1053_vm9, %v2154_v26, %v1964_v17  ;;  %v2107_v17 = vsel %vm969_vm5, %v2091_v55, %v3921_v59  ;;  %v4011_v26 = vld [vmem:[#allocation2 + $0xb0] sm:$0xff] }
 0x348   : > { %1663 = vrot.lane.b32.xlu0 %v1552_v0, %s2834_s15  ;;  %v2123_v37 = vsel %vm990_vm6, %v2107_v17, %v1774_v30  ;;  %v2092_v30 = vsel %vm948_vm4, %v2076_v62, %v3923_v4 }
 0x349   : > { %v1776_v39 = vpop.permute.xlu1 %1775 }
 0x34a   : > { %v3953_v21 = vpop.permute.xlu0 %1585 }
 0x34b   : > { %1977 = vrot.lane.b32.xlu1 %v1537_v28, %s2839_s9 }
 0x34c   : > { %1915 = vrot.lane.b32.xlu0 %v3950_v27, %s2838_s29 }
 0x34d   : > { %v2028_v6 = vpop.permute.xlu1 %2027 }
 0x34e   : > { %v1838_v0 = vpop.permute.xlu0 %1837  ;;  %v2186_v53 = vsel %vm1074_vm10, %v2170_v5, %v2028_v6  ;;  %v2108_v5 = vsel %vm969_vm5, %v2092_v30, %v3934_v8 }
 0x34f   : > { %1789 = vrot.lane.b32.xlu1 %v1537_v28, %s2836_s17  ;;  %2702 = vmatmul.mubr.msk.f32.vlgmr.msra.gmra.mrb[0].mxu1 %vm1107_vm11, %v2186_v53  ;;  %v2124_v3 = vsel %vm990_vm6, %v2108_v5, %v1776_v39  ;;  %v1555_v39 = vld [vmem:[#allocation2 + $0xaa] sm:$0xff] }
 0x350   : > { %1727 = vrot.lane.b32.xlu0 %v3950_v27, %s2833_s14 }
 0x351   : > { %v3967_v44 = vpop.permute.xlu1 %1649 }
 0x352   : > { %v3969_v23 = vpop.permute.xlu0 %1587 }
 0x353   : > { %2041 = vrot.lane.b32.xlu1 %v1553_v48, %s2840_s25 }
 0x354   : > { %1979 = vrot.lane.b32.xlu0 %v1538_v12, %s2839_s9 }
 0x355   : > { %v1902_v52 = vpop.permute.xlu1 %1901 }
 0x356   : > { %v1840_v10 = vpop.permute.xlu0 %1839 }
 0x357   : > { %1791 = vrot.lane.b32.xlu1 %v1538_v12, %s2836_s17  ;;  %v2140_v2 = vsel %vm1011_vm7, %v2124_v3, %v1840_v10 }
 0x358   : > { %1601 = vrot.lane.b32.xlu0 %v1537_v28, %s2835_s16  ;;  %v2139_v28 = vsel %vm1011_vm7, %v2123_v37, %v1838_v0 }
 0x359   : > { %v3975_v13 = vpop.permute.xlu1 %1713  ;;  %v2155_v51 = vsel %vm1032_vm8, %v2139_v28, %v1902_v52  ;;  %v1540_v52 = vld [vmem:[#allocation2 + $0xb1] sm:$0xff] }
 0x35a   : > { %v3977_v7 = vpop.permute.xlu0 %1651 }
 0x35b   : > { %2043 = vrot.lane.b32.xlu1 %v1554_v40, %s2840_s25 }
 0x35c   : > { %1853 = vrot.lane.b32.xlu0 %v1553_v48, %s2837_s19 }
 0x35d   : > { %v1966_v60 = vpop.permute.xlu1 %1965 }
 0x35e   : > { %v1904_v42 = vpop.permute.xlu0 %1903  ;;  %v2171_v57 = vsel %vm1053_vm9, %v2155_v51, %v1966_v60  ;;  %v2077_v51 = vsel %vm927_vm3, %v3806_v45, %v3953_v21 }
 0x35f   : > { %1665 = vrot.lane.b32.xlu1 %v1553_v48, %s2834_s15  ;;  %v2156_v4 = vsel %vm1032_vm8, %v2140_v2, %v1904_v42  ;;  %v1541_v2 = vld [vmem:[#allocation2 + $0xc1] sm:$0xff] }
 0x360   : > { %1603 = vrot.lane.b32.xlu0 %v1538_v12, %s2835_s16 }
 0x361   : > { %v1778_v25 = vpop.permute.xlu1 %1777 }
 0x362   : > { %v3992_v36 = vpop.permute.xlu0 %1715 }
 0x363   : > { %1917 = vrot.lane.b32.xlu1 %v3988_v47, %s2838_s29 }
 0x364   : > { %1855 = vrot.lane.b32.xlu0 %v1554_v40, %s2837_s19 }
 0x365   : > { %v2030_v38 = vpop.permute.xlu1 %2029 }
 0x366   : > { %v1968_v14 = vpop.permute.xlu0 %1967  ;;  %v2187_v59 = vsel %vm1074_vm10, %v2171_v57, %v2030_v38  ;;  %v2093_v57 = vsel %vm948_vm4, %v2077_v51, %v3967_v44  ;;  %v1525_v38 = vld [vmem:[#allocation2 + $0xc0] sm:$0xff]  ;;  %v1511_v51 = vld [vmem:[#allocation2 + $0xca] sm:$0xff] }
 0x367   : > { %1729 = vrot.lane.b32.xlu1 %v3988_v47, %s2833_s14  ;;  %2704 = vmatprep.mubr.msk.f32.mxu1 %vm1107_vm11, %v2187_v59  ;;  %v2172_v53 = vsel %vm1053_vm9, %v2156_v4, %v1968_v14  ;;  %v2109_v14 = vsel %vm969_vm5, %v2093_v57, %v3975_v13  ;;  %v2078_v13 = vsel %vm927_vm3, %v3826_v18, %v3969_v23  ;;  %v1526_v4 = vld [vmem:[#allocation2 + $0xc8] sm:$0xff] }
 0x368   : > { %1667 = vrot.lane.b32.xlu0 %v1554_v40, %s2834_s15  ;;  %v2125_v30 = vsel %vm990_vm6, %v2109_v14, %v1778_v25  ;;  %v2094_v25 = vsel %vm948_vm4, %v2078_v13, %v3977_v7  ;;  %v1528_v14 = vld [vmem:[#allocation2 + $0xe0] sm:$0xff] }
 0x369   : > { %v1780_v6 = vpop.permute.xlu1 %1779 }
 0x36a   : > { %v4015_v0 = vpop.permute.xlu0 %1589 }
 0x36b   : > { %1981 = vrot.lane.b32.xlu1 %v1539_v58, %s2839_s9 }
 0x36c   : > { %1919 = vrot.lane.b32.xlu0 %v4011_v26, %s2838_s29 }
 0x36d   : > { %v2032_v48 = vpop.permute.xlu1 %2031 }
 0x36e   : > { %v1842_v12 = vpop.permute.xlu0 %1841  ;;  %v2188_v8 = vsel %vm1074_vm10, %v2172_v53, %v2032_v48  ;;  %v2110_v53 = vsel %vm969_vm5, %v2094_v25, %v3992_v36  ;;  %v1557_v36 = vld [vmem:[#allocation2 + $0xc2] sm:$0xff] }
 0x36f   : > { %1793 = vrot.lane.b32.xlu1 %v1539_v58, %s2836_s17  ;;  %2705 = vmatmul.mubr.msk.f32.gmra.mrb[2].mxu1 %vm1107_vm11, %v2188_v8  ;;  %v2126_v8 = vsel %vm990_vm6, %v2110_v53, %v1780_v6  ;;  %v1542_v6 = vld [vmem:[#allocation2 + $0xc9] sm:$0xff] }
 0x370   : > { %1731 = vrot.lane.b32.xlu0 %v4011_v26, %s2833_s14 }
 0x371   : > { %v4029_v10 = vpop.permute.xlu1 %1653 }
 0x372   : > { %v4031_v40 = vpop.permute.xlu0 %1591 }
 0x373   : > { %2045 = vrot.lane.b32.xlu1 %v1555_v39, %s2840_s25 }
 0x374   : > { %1983 = vrot.lane.b32.xlu0 %v1540_v52, %s2839_s9 }
 0x375   : > { %v1906_v60 = vpop.permute.xlu1 %1905 }
 0x376   : > { %v1844_v42 = vpop.permute.xlu0 %1843 }
 0x377   : > { %1795 = vrot.lane.b32.xlu1 %v1540_v52, %s2836_s17  ;;  %v2142_v18 = vsel %vm1011_vm7, %v2126_v8, %v1844_v42  ;;  %v1559_v8 = vld [vmem:[#allocation2 + $0xda] sm:$0xff] }
 0x378   : > { %1605 = vrot.lane.b32.xlu0 %v1539_v58, %s2835_s16  ;;  %v2141_v58 = vsel %vm1011_vm7, %v2125_v30, %v1842_v12  ;;  %v1527_v30 = vld [vmem:[#allocation2 + $0xd8] sm:$0xff] }
 0x379   : > { %v4037_v55 = vpop.permute.xlu1 %1717  ;;  %v2157_v45 = vsel %vm1032_vm8, %v2141_v58, %v1906_v60 }
 0x37a   : > { %v4039_v17 = vpop.permute.xlu0 %1655 }
 0x37b   : > { %2047 = vrot.lane.b32.xlu1 %v1556_v46, %s2840_s25 }
 0x37c   : > { %1857 = vrot.lane.b32.xlu0 %v1555_v39, %s2837_s19 }
 0x37d   : > { %v1970_v37 = vpop.permute.xlu1 %1969 }
 0x37e   : > { %v1908_v28 = vpop.permute.xlu0 %1907  ;;  %v2173_v21 = vsel %vm1053_vm9, %v2157_v45, %v1970_v37 }
 0x37f   : > { %1669 = vrot.lane.b32.xlu1 %v1555_v39, %s2834_s15  ;;  %v2158_v23 = vsel %vm1032_vm8, %v2142_v18, %v1908_v28 }
 0x380   : > { %1607 = vrot.lane.b32.xlu0 %v1540_v52, %s2835_s16 }
 0x381   : > { %v1782_v59 = vpop.permute.xlu1 %1781 }
 0x382   : > { %v4052_v62 = vpop.permute.xlu0 %1719 }
 0x383   : > { %1921 = vrot.lane.b32.xlu1 %v1525_v38, %s2838_s29 }
 0x384   : > { %1859 = vrot.lane.b32.xlu0 %v1556_v46, %s2837_s19 }
 0x385   : > { %v2034_v44 = vpop.permute.xlu1 %2033 }
 0x386   : > { %v1972_v5 = vpop.permute.xlu0 %1971  ;;  %v2189_v3 = vsel %vm1074_vm10, %v2173_v21, %v2034_v44  ;;  %v2079_v21 = vsel %vm927_vm3, %v3847_v29, %v4015_v0  ;;  %v1560_v0 = vld [vmem:[#allocation2 + $0xe2] sm:$0xff] }
 0x387   : > { %1733 = vrot.lane.b32.xlu1 %v1525_v38, %s2833_s14  ;;  %2707 = vmatprep.mubr.msk.f32.mxu1 %vm1107_vm11, %v2189_v3  ;;  %v2174_v7 = vsel %vm1053_vm9, %v2158_v23, %v1972_v5  ;;  %v2095_v44 = vsel %vm948_vm4, %v2079_v21, %v4029_v10  ;;  %v1544_v5 = vld [vmem:[#allocation2 + $0xe1] sm:$0xff]  ;;  %v1543_v3 = vld [vmem:[#allocation2 + $0xd9] sm:$0xff] }
 0x388   : > { %1671 = vrot.lane.b32.xlu0 %v1556_v46, %s2834_s15  ;;  %v2111_v13 = vsel %vm969_vm5, %v2095_v44, %v4037_v55 }
 0x389   : > { %v1784_v48 = vpop.permute.xlu1 %1783 }
 0x38a   : > { %v4071_v12 = vpop.permute.xlu0 %1593 }
 0x38b   : > { %1985 = vrot.lane.b32.xlu1 %v1541_v2, %s2839_s9 }
 0x38c   : > { %1923 = vrot.lane.b32.xlu0 %v1526_v4, %s2838_s29 }
 0x38d   : > { %v2036_v39 = vpop.permute.xlu1 %2035 }
 0x38e   : > { %v1846_v52 = vpop.permute.xlu0 %1845  ;;  %v2190_v60 = vsel %vm1074_vm10, %v2174_v7, %v2036_v39 }
 0x38f   : > { %1797 = vrot.lane.b32.xlu1 %v1541_v2, %s2836_s17  ;;  %2708 = vmatmul.mubr.msk.f32.gmra.mrb[4].mxu1 %vm1107_vm11, %v2190_v60 }
 0x390   : > { %1735 = vrot.lane.b32.xlu0 %v1526_v4, %s2833_s14  ;;  %v2127_v4 = vsel %vm990_vm6, %v2111_v13, %v1782_v59  ;;  %v2080_v59 = vsel %vm927_vm3, %v3855_v31, %v4031_v40 }
 0x391   : > { %v4083_v42 = vpop.permute.xlu1 %1657  ;;  %v2143_v53 = vsel %vm1011_vm7, %v2127_v4, %v1846_v52  ;;  %v2096_v7 = vsel %vm948_vm4, %v2080_v59, %v4039_v17 }
 0x392   : > { %v4085_v46 = vpop.permute.xlu0 %1595  ;;  %v2112_v39 = vsel %vm969_vm5, %v2096_v7, %v4052_v62 }
 0x393   : > { %2049 = vrot.lane.b32.xlu1 %v1557_v36, %s2840_s25 }
 0x394   : > { %1987 = vrot.lane.b32.xlu0 %v1542_v6, %s2839_s9 }
 0x395   : > { %v1910_v37 = vpop.permute.xlu1 %1909 }
 0x396   : > { %v1848_v28 = vpop.permute.xlu0 %1847  ;;  %v2159_v29 = vsel %vm1032_vm8, %v2143_v53, %v1910_v37 }
 0x397   : > { %1861 = vrot.lane.b32.xlu1 %v1557_v36, %s2837_s19  ;;  %v2128_v36 = vsel %vm990_vm6, %v2112_v39, %v1784_v48 }
 0x398   : > { %1799 = vrot.lane.b32.xlu0 %v1542_v6, %s2836_s17  ;;  %v2144_v6 = vsel %vm1011_vm7, %v2128_v36, %v1848_v28  ;;  %v2081_v28 = vsel %vm927_vm3, %v3871_v32, %v4071_v12  ;;  %v2082_v32 = vsel %vm927_vm3, %v3879_v24, %v4085_v46 }
 0x399   : > { %v1722_v57 = vpop.permute.xlu1 %1721 }
 0x39a   : > { %v4091_v38 = vpop.permute.xlu0 %1659 }
 0x39b   : > { %1863 = vrot.lane.b32.xlu1 %v1511_v51, %s2837_s19  ;;  %v2098_v12 = vsel %vm948_vm4, %v2082_v32, %v4091_v38 }
 0x39c   : > { %2051 = vrot.lane.b32.xlu0 %v1511_v51, %s2840_s25 }
 0x39d   : > { %v1974_v58 = vpop.permute.xlu1 %1973 }
 0x39e   : > { %v1912_v45 = vpop.permute.xlu0 %1911  ;;  %v2175_v10 = vsel %vm1053_vm9, %v2159_v29, %v1974_v58 }
 0x39f   : > { %1927 = vrot.lane.b32.xlu1 %v1528_v14, %s2838_s29  ;;  %v2160_v31 = vsel %vm1032_vm8, %v2144_v6, %v1912_v45  ;;  %v2097_v45 = vsel %vm948_vm4, %v2081_v28, %v4083_v42 }
 0x3a0   : > { %1925 = vrot.lane.b32.xlu0 %v1527_v30, %s2838_s29 }
 0x3a1   : > { %v1786_v25 = vpop.permute.xlu1 %1785 }
 0x3a2   : > { %v1724_v2 = vpop.permute.xlu0 %1723 }
 0x3a3   : > { %1991 = vrot.lane.b32.xlu1 %v1544_v5, %s2839_s9  ;;  %v2114_v42 = vsel %vm969_vm5, %v2098_v12, %v1724_v2 }
 0x3a4   : > { %1989 = vrot.lane.b32.xlu0 %v1543_v3, %s2839_s9  ;;  %v2113_v3 = vsel %vm969_vm5, %v2097_v45, %v1722_v57 }
 0x3a5   : > { %v2038_v18 = vpop.permute.xlu1 %2037  ;;  %v2129_v53 = vsel %vm990_vm6, %v2113_v3, %v1786_v25 }
 0x3a6   : > { %v1976_v23 = vpop.permute.xlu0 %1975  ;;  %v2191_v55 = vsel %vm1074_vm10, %v2175_v10, %v2038_v18 }
 0x3a7   : > { %2055 = vrot.lane.b32.xlu1 %v1560_v0, %s2840_s25  ;;  %2710 = vmatprep.mubr.msk.f32.mxu1 %vm1107_vm11, %v2191_v55  ;;  %v2176_v40 = vsel %vm1053_vm9, %v2160_v31, %v1976_v23 }
 0x3a8   : > { %2053 = vrot.lane.b32.xlu0 %v1559_v8, %s2840_s25 }
 0x3a9   : > { %v1788_v52 = vpop.permute.xlu1 %1787 }
 0x3aa   : > { %v1598_v60 = vpop.permute.xlu0 %1597  ;;  %v2130_v55 = vsel %vm990_vm6, %v2114_v42, %v1788_v52 }
 0x3ad   : > { %v2040_v37 = vpop.permute.xlu1 %2039 }
 0x3ae   : > { %v1850_v51 = vpop.permute.xlu0 %1849  ;;  %v2192_v14 = vsel %vm1074_vm10, %v2176_v40, %v2040_v37 }
 0x3af   : > { %2711 = vmatmul.mubr.msk.f32.gmra.mrb[6].mxu1 %vm1107_vm11, %v2192_v14  ;;  %v2145_v29 = vsel %vm1011_vm7, %v2129_v53, %v1850_v51  ;;  %v2083_v14 = vsel %vm927_vm3, %v3895_v1, %v1598_v60 }
 0x3b1   : > { %v1662_v17 = vpop.permute.xlu1 %1661 }
 0x3b2   : > { %v1600_v30 = vpop.permute.xlu0 %1599 }
 0x3b3   : > { %v2084_v1 = vsel %vm927_vm3, %v3903_v49, %v1600_v30 }
 0x3b5   : > { %v1914_v58 = vpop.permute.xlu1 %1913 }
 0x3b6   : > { %v1852_v62 = vpop.permute.xlu0 %1851  ;;  %v2161_v0 = vsel %vm1032_vm8, %v2145_v29, %v1914_v58  ;;  %v2099_v58 = vsel %vm948_vm4, %v2083_v14, %v1662_v17 }
 0x3b7   : > { %v2146_v59 = vsel %vm1011_vm7, %v2130_v55, %v1852_v62 }
 0x3b9   : > { %v1726_v21 = vpop.permute.xlu1 %1725 }
 0x3ba   : > { %v1664_v44 = vpop.permute.xlu0 %1663  ;;  %v2115_v62 = vsel %vm969_vm5, %v2099_v58, %v1726_v21 }
 0x3bb   : > { %v2100_v60 = vsel %vm948_vm4, %v2084_v1, %v1664_v44 }
 0x3bd   : > { %v1978_v5 = vpop.permute.xlu1 %1977 }
 0x3be   : > { %v1916_v48 = vpop.permute.xlu0 %1915  ;;  %v2177_v8 = vsel %vm1053_vm9, %v2161_v0, %v1978_v5 }
 0x3bf   : > { %v2162_v7 = vsel %vm1032_vm8, %v2146_v59, %v1916_v48 }
 0x3c1   : > { %v1790_v13 = vpop.permute.xlu1 %1789 }
 0x3c2   : > { %v1728_v4 = vpop.permute.xlu0 %1727  ;;  %v2131_v28 = vsel %vm990_vm6, %v2115_v62, %v1790_v13 }
 0x3c3   : > { %v2116_v17 = vsel %vm969_vm5, %v2100_v60, %v1728_v4 }
 0x3c5   : > { %v2042_v10 = vpop.permute.xlu1 %2041 }
 0x3c6   : > { %v1980_v18 = vpop.permute.xlu0 %1979  ;;  %v2193_v23 = vsel %vm1074_vm10, %v2177_v8, %v2042_v10 }
 0x3c7   : > { %2713 = vmatprep.mubr.msk.f32.mxu1 %vm1107_vm11, %v2193_v23  ;;  %v2178_v39 = vsel %vm1053_vm9, %v2162_v7, %v1980_v18 }
 0x3c9   : > { %v1792_v57 = vpop.permute.xlu1 %1791 }
 0x3ca   : > { %v1602_v25 = vpop.permute.xlu0 %1601  ;;  %v2132_v10 = vsel %vm990_vm6, %v2116_v17, %v1792_v57 }
 0x3cd   : > { %v2044_v36 = vpop.permute.xlu1 %2043 }
 0x3ce   : > { %v1854_v6 = vpop.permute.xlu0 %1853  ;;  %v2194_v24 = vsel %vm1074_vm10, %v2178_v39, %v2044_v36  ;;  %v2085_v36 = vsel %vm927_vm3, %v3931_v16, %v1602_v25 }
 0x3cf   : > { %2714 = vmatmul.mubr.msk.f32.gmra.mrb[8].mxu1 %vm1107_vm11, %v2194_v24  ;;  %v2147_v45 = vsel %vm1011_vm7, %v2131_v28, %v1854_v6 }
 0x3d1   : > { %v1666_v46 = vpop.permute.xlu1 %1665 }
 0x3d2   : > { %v1604_v38 = vpop.permute.xlu0 %1603  ;;  %v2101_v6 = vsel %vm948_vm4, %v2085_v36, %v1666_v46 }
 0x3d3   : > { %v2086_v16 = vsel %vm927_vm3, %v3950_v27, %v1604_v38 }
 0x3d5   : > { %v1918_v31 = vpop.permute.xlu1 %1917 }
 0x3d6   : > { %v1856_v2 = vpop.permute.xlu0 %1855  ;;  %v2163_v3 = vsel %vm1032_vm8, %v2147_v45, %v1918_v31 }
 0x3d7   : > { %v2148_v18 = vsel %vm1011_vm7, %v2132_v10, %v1856_v2 }
 0x3d9   : > { %v1730_v40 = vpop.permute.xlu1 %1729 }
 0x3da   : > { %v1668_v37 = vpop.permute.xlu0 %1667  ;;  %v2117_v24 = vsel %vm969_vm5, %v2101_v6, %v1730_v40 }
 0x3db   : > { %v2102_v25 = vsel %vm948_vm4, %v2086_v16, %v1668_v37 }
 0x3dd   : > { %v1982_v51 = vpop.permute.xlu1 %1981 }
 0x3de   : > { %v1920_v52 = vpop.permute.xlu0 %1919  ;;  %v2179_v53 = vsel %vm1053_vm9, %v2163_v3, %v1982_v51 }
 0x3df   : > { %v2164_v23 = vsel %vm1032_vm8, %v2148_v18, %v1920_v52 }
 0x3e1   : > { %v1794_v5 = vpop.permute.xlu1 %1793 }
 0x3e2   : > { %v1732_v48 = vpop.permute.xlu0 %1731  ;;  %v2133_v51 = vsel %vm990_vm6, %v2117_v24, %v1794_v5 }
 0x3e3   : > { %v2118_v46 = vsel %vm969_vm5, %v2102_v25, %v1732_v48 }
 0x3e5   : > { %v2046_v29 = vpop.permute.xlu1 %2045 }
 0x3e6   : > { %v1984_v0 = vpop.permute.xlu0 %1983  ;;  %v2195_v8 = vsel %vm1074_vm10, %v2179_v53, %v2046_v29 }
 0x3e7   : > { %2716 = vmatprep.mubr.msk.f32.mxu1 %vm1107_vm11, %v2195_v8  ;;  %v2180_v32 = vsel %vm1053_vm9, %v2164_v23, %v1984_v0 }
 0x3e9   : > { %v1796_v21 = vpop.permute.xlu1 %1795 }
 0x3ea   : > { %v1606_v13 = vpop.permute.xlu0 %1605  ;;  %v2134_v3 = vsel %vm990_vm6, %v2118_v46, %v1796_v21 }
 0x3eb   : > { %v2087_v48 = vsel %vm927_vm3, %v3988_v47, %v1606_v13 }
 0x3ed   : > { %v2048_v12 = vpop.permute.xlu1 %2047 }
 0x3ee   : > { %v1858_v42 = vpop.permute.xlu0 %1857  ;;  %v2196_v49 = vsel %vm1074_vm10, %v2180_v32, %v2048_v12 }
 0x3ef   : > { %2717 = vmatmul.mubr.msk.f32.gmra.mrb[10].mxu1 %vm1107_vm11, %v2196_v49  ;;  %v2149_v52 = vsel %vm1011_vm7, %v2133_v51, %v1858_v42 }
 0x3f1   : > { %v1670_v30 = vpop.permute.xlu1 %1669 }
 0x3f2   : > { %v1608_v44 = vpop.permute.xlu0 %1607  ;;  %v2103_v17 = vsel %vm948_vm4, %v2087_v48, %v1670_v30 }
 0x3f3   : > { %v2088_v60 = vsel %vm927_vm3, %v4011_v26, %v1608_v44 }
 0x3f5   : > { %v1922_v55 = vpop.permute.xlu1 %1921 }
 0x3f6   : > { %v1860_v4 = vpop.permute.xlu0 %1859  ;;  %v2165_v14 = vsel %vm1032_vm8, %v2149_v52, %v1922_v55 }
 0x3f7   : > { %v2150_v53 = vsel %vm1011_vm7, %v2134_v3, %v1860_v4 }
 0x3f9   : > { %v1734_v59 = vpop.permute.xlu1 %1733 }
 0x3fa   : > { %v1672_v7 = vpop.permute.xlu0 %1671  ;;  %v2119_v10 = vsel %vm969_vm5, %v2103_v17, %v1734_v59 }
 0x3fb   : > { %v2104_v21 = vsel %vm948_vm4, %v2088_v60, %v1672_v7 }
 0x3fd   : > { %v1986_v39 = vpop.permute.xlu1 %1985 }
 0x3fe   : > { %v1924_v57 = vpop.permute.xlu0 %1923  ;;  %v2181_v58 = vsel %vm1053_vm9, %v2165_v14, %v1986_v39  ;;  %v2585_v39 = vld [vmem:[%s4281_s4] ss:$0 sm:$0xff] }
 0x3ff   : > { %v2166_v29 = vsel %vm1032_vm8, %v2150_v53, %v1924_v57 }
 0x401   : > { %v1798_v31 = vpop.permute.xlu1 %1797 }
 0x402   : > { %v1736_v2 = vpop.permute.xlu0 %1735  ;;  %v2135_v12 = vsel %vm990_vm6, %v2119_v10, %v1798_v31 }
 0x403   : > { %v2120_v18 = vsel %vm969_vm5, %v2104_v21, %v1736_v2 }
 0x405   : > { %v2050_v62 = vpop.permute.xlu1 %2049 }
 0x406   : > { %v1988_v28 = vpop.permute.xlu0 %1987  ;;  %v2197_v45 = vsel %vm1074_vm10, %v2181_v58, %v2050_v62 }
 0x407   : > { %2719 = vmatprep.mubr.msk.f32.mxu1 %vm1107_vm11, %v2197_v45  ;;  %v2182_v0 = vsel %vm1053_vm9, %v2166_v29, %v1988_v28 }
 0x409   : > { %v1862_v40 = vpop.permute.xlu1 %1861 }
 0x40a   : > { %v1800_v5 = vpop.permute.xlu0 %1799  ;;  %v2151_v49 = vsel %vm1011_vm7, %v2135_v12, %v1862_v40 }
 0x40b   : > { %v2136_v42 = vsel %vm990_vm6, %v2120_v18, %v1800_v5 }
 0x40d   : > { %v1864_v8 = vpop.permute.xlu1 %1863 }
 0x40e   : > { %v2052_v1 = vpop.permute.xlu0 %2051  ;;  %v2152_v47 = vsel %vm1011_vm7, %v2136_v42, %v1864_v8 }
 0x40f   : > { %v2198_v27 = vsel %vm1074_vm10, %v2182_v0, %v2052_v1 }
 0x410   : > { %2720 = vmatmul.mubr.msk.f32.gmra.mrb[12].mxu1 %vm1107_vm11, %v2198_v27 }
 0x411   : > { %v1928_v38 = vpop.permute.xlu1 %1927 }
 0x412   : > { %v1926_v37 = vpop.permute.xlu0 %1925  ;;  %v2168_v26 = vsel %vm1032_vm8, %v2152_v47, %v1928_v38 }
 0x413   : > { %v2167_v13 = vsel %vm1032_vm8, %v2151_v49, %v1926_v37 }
 0x415   : > { %v1992_v23 = vpop.permute.xlu1 %1991 }
 0x416   : > { %v1990_v32 = vpop.permute.xlu0 %1989  ;;  %v2184_v30 = vsel %vm1053_vm9, %v2168_v26, %v1992_v23 }
 0x417   : > { %v2183_v44 = vsel %vm1053_vm9, %v2167_v13, %v1990_v32 }
 0x419   : > { %v2056_v55 = vpop.permute.xlu1 %2055 }
 0x41a   : > { %v2054_v4 = vpop.permute.xlu0 %2053  ;;  %v2200_v59 = vsel %vm1074_vm10, %v2184_v30, %v2056_v55 }
 0x41b   : > { %v2199_v7 = vsel %vm1074_vm10, %v2183_v44, %v2054_v4 }
 0x41c   : > { %2722 = vmatprep.mubr.msk.f32.mxu1 %vm1107_vm11, %v2199_v7 }
 0x41d   : > { %2723 = vmatmul.mubr.msk.f32.gmra.mrb[14].mxu1 %vm1107_vm11, %v2200_v59 }
 0x422   : > { %v2703_v57 = vpop.f32.mrb[0].mxu1 }
 0x423   : > { %v2336_v36 = vadd.f32 %v2703_v57, %v2585_v39  ;;  %v2330_v6 = vpop.f32.mrb[1].mxu1 }
 0x424   : > { %v2331_v24 = vadd.f32 %v2585_v39, %v2330_v6 }
 0x425   : > { %v2426_v31 = vadd.f32 %v2336_v36, %v3008_v43 }
 0x426   : > { %v2425_v2 = vadd.f32 %v2331_v24, %v2989_v35 }
 0x427   : > { %2442 = vst.msk [vmem:[%s2916_s13 + $0x8] sm:$0xff] %vm927_vm3, %v2426_v31 }
 0x428   : > { %2441 = vst.msk [vmem:[%s2916_s13] sm:$0xff] %vm927_vm3, %v2425_v2 }
 0x442   : > { %v2706_v51 = vpop.f32.mrb[2].mxu1 }
 0x443   : > { %v2346_v52 = vadd.f32 %v2706_v51, %v2585_v39  ;;  %v2340_v14 = vpop.f32.mrb[3].mxu1 }
 0x444   : > { %v2341_v58 = vadd.f32 %v2585_v39, %v2340_v14 }
 0x445   : > { %v2428_v62 = vadd.f32 %v2346_v52, %v3054_v56 }
 0x446   : > { %v2427_v28 = vadd.f32 %v2341_v58, %v3039_v50 }
 0x447   : > { %2444 = vst.msk [vmem:[%s2916_s13 + $0x18] sm:$0xff] %vm927_vm3, %v2428_v62 }
 0x448   : > { %2443 = vst.msk [vmem:[%s2916_s13 + $0x10] sm:$0xff] %vm927_vm3, %v2427_v28 }
 0x462   : > { %v2709_v35 = vpop.f32.mrb[4].mxu1 }
 0x463   : > { %v2356_v43 = vadd.f32 %v2709_v35, %v2585_v39  ;;  %v2350_v45 = vpop.f32.mrb[5].mxu1 }
 0x464   : > { %v2351_v16 = vadd.f32 %v2585_v39, %v2350_v45 }
 0x465   : > { %v2430_v25 = vadd.f32 %v2356_v43, %v3099_v9 }
 0x466   : > { %v2429_v46 = vadd.f32 %v2351_v16, %v3084_v63 }
 0x467   : > { %2446 = vst.msk [vmem:[%s2916_s13 + $0x28] sm:$0xff] %vm927_vm3, %v2430_v25 }
 0x468   : > { %2445 = vst.msk [vmem:[%s2916_s13 + $0x20] sm:$0xff] %vm927_vm3, %v2429_v46 }
 0x482   : > { %v2712_v50 = vpop.f32.mrb[6].mxu1 }
 0x483   : > { %v2366_v56 = vadd.f32 %v2712_v50, %v2585_v39  ;;  %v2360_v40 = vpop.f32.mrb[7].mxu1 }
 0x484   : > { %v2361_v5 = vadd.f32 %v2585_v39, %v2360_v40 }
 0x485   : > { %v2432_v3 = vadd.f32 %v2366_v56, %v3150_v34 }
 0x486   : > { %v2431_v53 = vadd.f32 %v2361_v5, %v3133_v22 }
 0x487   : > { %2448 = vst.msk [vmem:[%s2916_s13 + $0x38] sm:$0xff] %vm927_vm3, %v2432_v3 }
 0x488   : > { %2447 = vst.msk [vmem:[%s2916_s13 + $0x30] sm:$0xff] %vm927_vm3, %v2431_v53 }
 0x4a2   : > { %v2715_v63 = vpop.f32.mrb[8].mxu1 }
 0x4a3   : > { %v2376_v9 = vadd.f32 %v2715_v63, %v2585_v39  ;;  %v2370_v29 = vpop.f32.mrb[9].mxu1 }
 0x4a4   : > { %v2371_v0 = vadd.f32 %v2585_v39, %v2370_v29 }
 0x4a5   : > { %v2434_v8 = vadd.f32 %v2376_v9, %v3233_v33 }
 0x4a6   : > { %v2433_v1 = vadd.f32 %v2371_v0, %v3206_v11 }
 0x4a7   : > { %2450 = vst.msk [vmem:[%s2916_s13 + $0x48] sm:$0xff] %vm927_vm3, %v2434_v8 }
 0x4a8   : > { %2449 = vst.msk [vmem:[%s2916_s13 + $0x40] sm:$0xff] %vm927_vm3, %v2433_v1 }
 0x4c2   : > { %v2718_v22 = vpop.f32.mrb[10].mxu1 }
 0x4c3   : > { %v2386_v34 = vadd.f32 %v2718_v22, %v2585_v39  ;;  %v2380_v27 = vpop.f32.mrb[11].mxu1 }
 0x4c4   : > { %v2381_v38 = vadd.f32 %v2585_v39, %v2380_v27 }
 0x4c5   : > { %v2436_v37 = vadd.f32 %v2386_v34, %v3322_v41 }
 0x4c6   : > { %v2435_v48 = vadd.f32 %v2381_v38, %v3294_v20 }
 0x4c7   : > { %2452 = vst.msk [vmem:[%s2916_s13 + $0x58] sm:$0xff] %vm927_vm3, %v2436_v37 }
 0x4c8   : > { %2451 = vst.msk [vmem:[%s2916_s13 + $0x50] sm:$0xff] %vm927_vm3, %v2435_v48 }
 0x4e3   : > { %v2721_v11 = vpop.f32.mrb[12].mxu1 }
 0x4e4   : > { %v2396_v33 = vadd.f32 %v2721_v11, %v2585_v39  ;;  %v2390_v60 = vpop.f32.mrb[13].mxu1 }
 0x4e5   : > { %v2391_v17 = vadd.f32 %v2585_v39, %v2390_v60 }
 0x4e6   : > { %v2438_v21 = vadd.f32 %v2396_v33, %v3411_v61 }
 0x4e7   : > { %v2437_v10 = vadd.f32 %v2391_v17, %v3383_v54 }
 0x4e8   : > { %2454 = vst.msk [vmem:[%s2916_s13 + $0x68] sm:$0xff] %vm927_vm3, %v2438_v21 }
 0x4e9   : > { %2453 = vst.msk [vmem:[%s2916_s13 + $0x60] sm:$0xff] %vm927_vm3, %v2437_v10 }
 0x4f0   : > { %v2724_v41 = vpop.f32.mrb[14].mxu1 }
 0x4f1   : > { %v2406_v20 = vadd.f32 %v2724_v41, %v2585_v39  ;;  %v2400_v18 = vpop.f32.mrb[15].mxu1 }
 0x4f2   : > { %v2401_v23 = vadd.f32 %v2585_v39, %v2400_v18 }
 0x4f3   : > { %v2440_v32 = vadd.f32 %v2406_v20, %v3500_v19 }
 0x4f4   : > { %v2439_v12 = vadd.f32 %v2401_v23, %v3472_v15 }
 0x4f5   : > { %2456 = vst.msk [vmem:[%s2916_s13 + $0x78] sm:$0xff] %vm927_vm3, %v2440_v32 }
 0x4f6   : > { %2455 = vst.msk [vmem:[%s2916_s13 + $0x70] sm:$0xff] %vm927_vm3, %v2439_v12 }
 0x4f7 PF: > { %s15_s22 = sadd.s32 1, %s2831_s22   ;;  %s4283_s18 = smov %s2823_s20 }
 0x4f8   : > { %p12_p9 = scmp.ge.s32.totalorder %s15_s22, 6   ;;  %s4284_s19 = smov %s2827_s21 }
 0x4f9   : > { %s4285_s20 = smov %s4288_s23  ;;  %s4286_s21 = smov %s4292_s24 }
 0x4fa   :  { %14 = sbr.rel (!%p12_p9) target bundleno = 3 (0x3), region = 82 }

</bundles_post_ra>
